<compile_context>
chip_gen: v7x
topology: tpu7x:2x2x1
jax: 0.10.0
libtpu: 0.0.40
codegen_flags: <defaults>
</compile_context>

<pallas_src>
import jax
import jax.numpy as jnp
from jax.experimental import pallas as pl
from jax.experimental.pallas import tpu as pltpu

HIDDEN = 10


def cascade1010_kernel(w1_ref, b1_ref, w2_ref, b2_ref, w3_ref, b3_ref, x_ref, o_ref):
    # x_ref / o_ref: (1, TILE_N) f32 lane strips; params are flat f32 arrays in SMEM.
    xv = x_ref[...]  # (1, TILE_N)

    # fc1 + ReLU:  h1[i] = relu(w1[i] * x + b1[i])      (rank-1 "matmul", K = 1)
    h1 = [jnp.maximum(w1_ref[i] * xv + b1_ref[i], 0.0) for i in range(HIDDEN)]

    # fc2 + ReLU:  h2[j] = relu(sum_k w2[j,k] * h1[k] + b2[j])   (10x10 on the VPU)
    h2 = []
    for j in range(HIDDEN):
        acc = h1[0] * w2_ref[j * HIDDEN + 0]
        for k in range(1, HIDDEN):
            acc = acc + h1[k] * w2_ref[j * HIDDEN + k]
        h2.append(jnp.maximum(acc + b2_ref[j], 0.0))

    # fc3:  y = sum_k w3[k] * h2[k] + b3   (b3 folded into the epilogue add)
    y = h2[0] * w3_ref[0]
    for k in range(1, HIDDEN):
        y = y + h2[k] * w3_ref[k]
    o_ref[...] = y + b3_ref[0]


def cascade1010_forward(x, params, *, tile_n=512):
    """x: (N, 1) f32; params = (w1(10,), b1(10,), w2(100,), b2(10,), w3(10,), b3(1,)).

    Returns (N, 1) f32, same semantics as the PyTorch Cascade1010 forward.
    """
    w1, b1, w2, b2, w3, b3 = params
    N = x.shape[0]

    # Lane-major: batch on the last (lane) dim, padded to a multiple of 128.
    n_pad = ((max(N, 1) + 127) // 128) * 128
    tile = min(tile_n, n_pad)
    n_pad = ((n_pad + tile - 1) // tile) * tile  # n_pad is a multiple of tile

    xp = jnp.zeros((1, n_pad), jnp.float32).at[:, :N].set(x.reshape(1, N))

    smem_spec = pl.BlockSpec(memory_space=pltpu.SMEM)
    out = pl.pallas_call(
        cascade1010_kernel,
        out_shape=jax.ShapeDtypeStruct((1, n_pad), jnp.float32),
        grid=(n_pad // tile,),
        in_specs=[
            smem_spec,  # w1
            smem_spec,  # b1
            smem_spec,  # w2 (flattened row-major, PyTorch [out, in] order)
            smem_spec,  # b2
            smem_spec,  # w3
            smem_spec,  # b3
            pl.BlockSpec((1, tile), lambda i: (0, i)),  # x (lane-dense)
        ],
        out_specs=pl.BlockSpec((1, tile), lambda i: (0, i)),  # lane-dense output
        compiler_params=pltpu.CompilerParams(dimension_semantics=("parallel",)),
    )(w1, b1, w2, b2, w3, b3, xp)

    return out[0, :N].reshape(N, 1)


def init_params(key):
    """Deterministic init mimicking PyTorch nn.Linear (uniform +/- 1/sqrt(fan_in))."""
    k1, k2, k3, k4, k5, k6 = jax.random.split(key, 6)
    # fc1: Linear(1, 10)  -> weight (10,1) stored flat (10,), bias (10,); bound 1/sqrt(1)
    bound1 = 1.0
    w1 = jax.random.uniform(k1, (HIDDEN,), jnp.float32, -bound1, bound1)
    b1 = jax.random.uniform(k2, (HIDDEN,), jnp.float32, -bound1, bound1)
    # fc2: Linear(10, 10) -> weight (10,10) stored flat row-major (100,), bias (10,)
    bound2 = 1.0 / jnp.sqrt(float(HIDDEN))
    w2 = jax.random.uniform(k3, (HIDDEN * HIDDEN,), jnp.float32, -bound2, bound2)
    b2 = jax.random.uniform(k4, (HIDDEN,), jnp.float32, -bound2, bound2)
    # fc3: Linear(10, 1)  -> weight (1,10) stored flat (10,), bias (1,)
    bound3 = 1.0 / jnp.sqrt(float(HIDDEN))
    w3 = jax.random.uniform(k5, (HIDDEN,), jnp.float32, -bound3, bound3)
    b3 = jax.random.uniform(k6, (1,), jnp.float32, -bound3, bound3)
    return w1, b1, w2, b2, w3, b3


def reference_forward(x, params):
    w1, b1, w2, b2, w3, b3 = params
    W2 = w2.reshape(HIDDEN, HIDDEN)  # PyTorch layout: [out_features, in_features]
    h1 = jnp.maximum(x * w1[None, :] + b1[None, :], 0.0)         # (N,1)->(N,10)
    h2 = jnp.maximum(h1 @ W2.T + b2[None, :], 0.0)               # (N,10)
    return h2 @ w3[:, None] + b3[None, :]                        # (N,1)


if __name__ == "__main__":
    key = jax.random.PRNGKey(0)
    # Input analogous to np.linspace(0, 1, 50) reshaped to (50, 1).
    x = jnp.linspace(0.0, 1.0, 50, dtype=jnp.float32).reshape(50, 1)

    params = init_params(key)

    out = cascade1010_forward(x, params)
    out = jax.block_until_ready(out)

    ref = reference_forward(x, params)
    assert out.shape == (50, 1)
    assert jnp.allclose(out, ref, atol=1e-5, rtol=1e-5)

    print("KERNEL_OK")
</pallas_src>

<mosaic_0001>
module attributes {stable_mosaic.version = 11 : i64} {
  func.func @cascade1010_kernel(%arg0: i32, %arg1: memref<10xf32, #tpu.memory_space<smem>>, %arg2: memref<10xf32, #tpu.memory_space<smem>>, %arg3: memref<100xf32, #tpu.memory_space<smem>>, %arg4: memref<10xf32, #tpu.memory_space<smem>>, %arg5: memref<10xf32, #tpu.memory_space<smem>>, %arg6: memref<1xf32, #tpu.memory_space<smem>>, %arg7: memref<1x128xf32, #tpu.memory_space<vmem>>, %arg8: memref<1x128xf32, #tpu.memory_space<vmem>>) attributes {dimension_semantics = [#tpu.dimension_semantics<parallel>], iteration_bounds = array<i64: 1>, scalar_prefetch = 0 : i64, scratch_operands = 0 : i64, tpu.core_type = #tpu.core_type<tc>, window_params = [{transform_indices = @transform_0, window_bounds = array<i64: 10>}, {transform_indices = @transform_1, window_bounds = array<i64: 10>}, {transform_indices = @transform_2, window_bounds = array<i64: 100>}, {transform_indices = @transform_3, window_bounds = array<i64: 10>}, {transform_indices = @transform_4, window_bounds = array<i64: 10>}, {transform_indices = @transform_5, window_bounds = array<i64: 1>}, {transform_indices = @transform_6, window_bounds = array<i64: 1, 128>}, {transform_indices = @transform_7, window_bounds = array<i64: 1, 128>}]} {
    %c0 = arith.constant 0 : index
    %c0_0 = arith.constant 0 : index
    %0 = vector.load %arg7[%c0, %c0_0] : memref<1x128xf32, #tpu.memory_space<vmem>>, vector<1x128xf32>
    %c0_1 = arith.constant 0 : index
    %1 = memref.load %arg1[%c0_1] : memref<10xf32, #tpu.memory_space<smem>>
    %2 = vector.broadcast %1 : f32 to vector<1x128xf32>
    %3 = arith.mulf %2, %0 : vector<1x128xf32>
    %c0_2 = arith.constant 0 : index
    %4 = memref.load %arg2[%c0_2] : memref<10xf32, #tpu.memory_space<smem>>
    %5 = vector.broadcast %4 : f32 to vector<1x128xf32>
    %6 = arith.addf %3, %5 : vector<1x128xf32>
    %cst = arith.constant 0.000000e+00 : f32
    %7 = vector.broadcast %cst : f32 to vector<1x128xf32>
    %8 = arith.maximumf %6, %7 : vector<1x128xf32>
    %c1 = arith.constant 1 : index
    %9 = memref.load %arg1[%c1] : memref<10xf32, #tpu.memory_space<smem>>
    %10 = vector.broadcast %9 : f32 to vector<1x128xf32>
    %11 = arith.mulf %10, %0 : vector<1x128xf32>
    %c1_3 = arith.constant 1 : index
    %12 = memref.load %arg2[%c1_3] : memref<10xf32, #tpu.memory_space<smem>>
    %13 = vector.broadcast %12 : f32 to vector<1x128xf32>
    %14 = arith.addf %11, %13 : vector<1x128xf32>
    %cst_4 = arith.constant 0.000000e+00 : f32
    %15 = vector.broadcast %cst_4 : f32 to vector<1x128xf32>
    %16 = arith.maximumf %14, %15 : vector<1x128xf32>
    %c2 = arith.constant 2 : index
    %17 = memref.load %arg1[%c2] : memref<10xf32, #tpu.memory_space<smem>>
    %18 = vector.broadcast %17 : f32 to vector<1x128xf32>
    %19 = arith.mulf %18, %0 : vector<1x128xf32>
    %c2_5 = arith.constant 2 : index
    %20 = memref.load %arg2[%c2_5] : memref<10xf32, #tpu.memory_space<smem>>
    %21 = vector.broadcast %20 : f32 to vector<1x128xf32>
    %22 = arith.addf %19, %21 : vector<1x128xf32>
    %cst_6 = arith.constant 0.000000e+00 : f32
    %23 = vector.broadcast %cst_6 : f32 to vector<1x128xf32>
    %24 = arith.maximumf %22, %23 : vector<1x128xf32>
    %c3 = arith.constant 3 : index
    %25 = memref.load %arg1[%c3] : memref<10xf32, #tpu.memory_space<smem>>
    %26 = vector.broadcast %25 : f32 to vector<1x128xf32>
    %27 = arith.mulf %26, %0 : vector<1x128xf32>
    %c3_7 = arith.constant 3 : index
    %28 = memref.load %arg2[%c3_7] : memref<10xf32, #tpu.memory_space<smem>>
    %29 = vector.broadcast %28 : f32 to vector<1x128xf32>
    %30 = arith.addf %27, %29 : vector<1x128xf32>
    %cst_8 = arith.constant 0.000000e+00 : f32
    %31 = vector.broadcast %cst_8 : f32 to vector<1x128xf32>
    %32 = arith.maximumf %30, %31 : vector<1x128xf32>
    %c4 = arith.constant 4 : index
    %33 = memref.load %arg1[%c4] : memref<10xf32, #tpu.memory_space<smem>>
    %34 = vector.broadcast %33 : f32 to vector<1x128xf32>
    %35 = arith.mulf %34, %0 : vector<1x128xf32>
    %c4_9 = arith.constant 4 : index
    %36 = memref.load %arg2[%c4_9] : memref<10xf32, #tpu.memory_space<smem>>
    %37 = vector.broadcast %36 : f32 to vector<1x128xf32>
    %38 = arith.addf %35, %37 : vector<1x128xf32>
    %cst_10 = arith.constant 0.000000e+00 : f32
    %39 = vector.broadcast %cst_10 : f32 to vector<1x128xf32>
    %40 = arith.maximumf %38, %39 : vector<1x128xf32>
    %c5 = arith.constant 5 : index
    %41 = memref.load %arg1[%c5] : memref<10xf32, #tpu.memory_space<smem>>
    %42 = vector.broadcast %41 : f32 to vector<1x128xf32>
    %43 = arith.mulf %42, %0 : vector<1x128xf32>
    %c5_11 = arith.constant 5 : index
    %44 = memref.load %arg2[%c5_11] : memref<10xf32, #tpu.memory_space<smem>>
    %45 = vector.broadcast %44 : f32 to vector<1x128xf32>
    %46 = arith.addf %43, %45 : vector<1x128xf32>
    %cst_12 = arith.constant 0.000000e+00 : f32
    %47 = vector.broadcast %cst_12 : f32 to vector<1x128xf32>
    %48 = arith.maximumf %46, %47 : vector<1x128xf32>
    %c6 = arith.constant 6 : index
    %49 = memref.load %arg1[%c6] : memref<10xf32, #tpu.memory_space<smem>>
    %50 = vector.broadcast %49 : f32 to vector<1x128xf32>
    %51 = arith.mulf %50, %0 : vector<1x128xf32>
    %c6_13 = arith.constant 6 : index
    %52 = memref.load %arg2[%c6_13] : memref<10xf32, #tpu.memory_space<smem>>
    %53 = vector.broadcast %52 : f32 to vector<1x128xf32>
    %54 = arith.addf %51, %53 : vector<1x128xf32>
    %cst_14 = arith.constant 0.000000e+00 : f32
    %55 = vector.broadcast %cst_14 : f32 to vector<1x128xf32>
    %56 = arith.maximumf %54, %55 : vector<1x128xf32>
    %c7 = arith.constant 7 : index
    %57 = memref.load %arg1[%c7] : memref<10xf32, #tpu.memory_space<smem>>
    %58 = vector.broadcast %57 : f32 to vector<1x128xf32>
    %59 = arith.mulf %58, %0 : vector<1x128xf32>
    %c7_15 = arith.constant 7 : index
    %60 = memref.load %arg2[%c7_15] : memref<10xf32, #tpu.memory_space<smem>>
    %61 = vector.broadcast %60 : f32 to vector<1x128xf32>
    %62 = arith.addf %59, %61 : vector<1x128xf32>
    %cst_16 = arith.constant 0.000000e+00 : f32
    %63 = vector.broadcast %cst_16 : f32 to vector<1x128xf32>
    %64 = arith.maximumf %62, %63 : vector<1x128xf32>
    %c8 = arith.constant 8 : index
    %65 = memref.load %arg1[%c8] : memref<10xf32, #tpu.memory_space<smem>>
    %66 = vector.broadcast %65 : f32 to vector<1x128xf32>
    %67 = arith.mulf %66, %0 : vector<1x128xf32>
    %c8_17 = arith.constant 8 : index
    %68 = memref.load %arg2[%c8_17] : memref<10xf32, #tpu.memory_space<smem>>
    %69 = vector.broadcast %68 : f32 to vector<1x128xf32>
    %70 = arith.addf %67, %69 : vector<1x128xf32>
    %cst_18 = arith.constant 0.000000e+00 : f32
    %71 = vector.broadcast %cst_18 : f32 to vector<1x128xf32>
    %72 = arith.maximumf %70, %71 : vector<1x128xf32>
    %c9 = arith.constant 9 : index
    %73 = memref.load %arg1[%c9] : memref<10xf32, #tpu.memory_space<smem>>
    %74 = vector.broadcast %73 : f32 to vector<1x128xf32>
    %75 = arith.mulf %74, %0 : vector<1x128xf32>
    %c9_19 = arith.constant 9 : index
    %76 = memref.load %arg2[%c9_19] : memref<10xf32, #tpu.memory_space<smem>>
    %77 = vector.broadcast %76 : f32 to vector<1x128xf32>
    %78 = arith.addf %75, %77 : vector<1x128xf32>
    %cst_20 = arith.constant 0.000000e+00 : f32
    %79 = vector.broadcast %cst_20 : f32 to vector<1x128xf32>
    %80 = arith.maximumf %78, %79 : vector<1x128xf32>
    %c0_21 = arith.constant 0 : index
    %81 = memref.load %arg3[%c0_21] : memref<100xf32, #tpu.memory_space<smem>>
    %82 = vector.broadcast %81 : f32 to vector<1x128xf32>
    %83 = arith.mulf %8, %82 : vector<1x128xf32>
    %c1_22 = arith.constant 1 : index
    %84 = memref.load %arg3[%c1_22] : memref<100xf32, #tpu.memory_space<smem>>
    %85 = vector.broadcast %84 : f32 to vector<1x128xf32>
    %86 = arith.mulf %16, %85 : vector<1x128xf32>
    %87 = arith.addf %83, %86 : vector<1x128xf32>
    %c2_23 = arith.constant 2 : index
    %88 = memref.load %arg3[%c2_23] : memref<100xf32, #tpu.memory_space<smem>>
    %89 = vector.broadcast %88 : f32 to vector<1x128xf32>
    %90 = arith.mulf %24, %89 : vector<1x128xf32>
    %91 = arith.addf %87, %90 : vector<1x128xf32>
    %c3_24 = arith.constant 3 : index
    %92 = memref.load %arg3[%c3_24] : memref<100xf32, #tpu.memory_space<smem>>
    %93 = vector.broadcast %92 : f32 to vector<1x128xf32>
    %94 = arith.mulf %32, %93 : vector<1x128xf32>
    %95 = arith.addf %91, %94 : vector<1x128xf32>
    %c4_25 = arith.constant 4 : index
    %96 = memref.load %arg3[%c4_25] : memref<100xf32, #tpu.memory_space<smem>>
    %97 = vector.broadcast %96 : f32 to vector<1x128xf32>
    %98 = arith.mulf %40, %97 : vector<1x128xf32>
    %99 = arith.addf %95, %98 : vector<1x128xf32>
    %c5_26 = arith.constant 5 : index
    %100 = memref.load %arg3[%c5_26] : memref<100xf32, #tpu.memory_space<smem>>
    %101 = vector.broadcast %100 : f32 to vector<1x128xf32>
    %102 = arith.mulf %48, %101 : vector<1x128xf32>
    %103 = arith.addf %99, %102 : vector<1x128xf32>
    %c6_27 = arith.constant 6 : index
    %104 = memref.load %arg3[%c6_27] : memref<100xf32, #tpu.memory_space<smem>>
    %105 = vector.broadcast %104 : f32 to vector<1x128xf32>
    %106 = arith.mulf %56, %105 : vector<1x128xf32>
    %107 = arith.addf %103, %106 : vector<1x128xf32>
    %c7_28 = arith.constant 7 : index
    %108 = memref.load %arg3[%c7_28] : memref<100xf32, #tpu.memory_space<smem>>
    %109 = vector.broadcast %108 : f32 to vector<1x128xf32>
    %110 = arith.mulf %64, %109 : vector<1x128xf32>
    %111 = arith.addf %107, %110 : vector<1x128xf32>
    %c8_29 = arith.constant 8 : index
    %112 = memref.load %arg3[%c8_29] : memref<100xf32, #tpu.memory_space<smem>>
    %113 = vector.broadcast %112 : f32 to vector<1x128xf32>
    %114 = arith.mulf %72, %113 : vector<1x128xf32>
    %115 = arith.addf %111, %114 : vector<1x128xf32>
    %c9_30 = arith.constant 9 : index
    %116 = memref.load %arg3[%c9_30] : memref<100xf32, #tpu.memory_space<smem>>
    %117 = vector.broadcast %116 : f32 to vector<1x128xf32>
    %118 = arith.mulf %80, %117 : vector<1x128xf32>
    %119 = arith.addf %115, %118 : vector<1x128xf32>
    %c0_31 = arith.constant 0 : index
    %120 = memref.load %arg4[%c0_31] : memref<10xf32, #tpu.memory_space<smem>>
    %121 = vector.broadcast %120 : f32 to vector<1x128xf32>
    %122 = arith.addf %119, %121 : vector<1x128xf32>
    %cst_32 = arith.constant 0.000000e+00 : f32
    %123 = vector.broadcast %cst_32 : f32 to vector<1x128xf32>
    %124 = arith.maximumf %122, %123 : vector<1x128xf32>
    %c10 = arith.constant 10 : index
    %125 = memref.load %arg3[%c10] : memref<100xf32, #tpu.memory_space<smem>>
    %126 = vector.broadcast %125 : f32 to vector<1x128xf32>
    %127 = arith.mulf %8, %126 : vector<1x128xf32>
    %c11 = arith.constant 11 : index
    %128 = memref.load %arg3[%c11] : memref<100xf32, #tpu.memory_space<smem>>
    %129 = vector.broadcast %128 : f32 to vector<1x128xf32>
    %130 = arith.mulf %16, %129 : vector<1x128xf32>
    %131 = arith.addf %127, %130 : vector<1x128xf32>
    %c12 = arith.constant 12 : index
    %132 = memref.load %arg3[%c12] : memref<100xf32, #tpu.memory_space<smem>>
    %133 = vector.broadcast %132 : f32 to vector<1x128xf32>
    %134 = arith.mulf %24, %133 : vector<1x128xf32>
    %135 = arith.addf %131, %134 : vector<1x128xf32>
    %c13 = arith.constant 13 : index
    %136 = memref.load %arg3[%c13] : memref<100xf32, #tpu.memory_space<smem>>
    %137 = vector.broadcast %136 : f32 to vector<1x128xf32>
    %138 = arith.mulf %32, %137 : vector<1x128xf32>
    %139 = arith.addf %135, %138 : vector<1x128xf32>
    %c14 = arith.constant 14 : index
    %140 = memref.load %arg3[%c14] : memref<100xf32, #tpu.memory_space<smem>>
    %141 = vector.broadcast %140 : f32 to vector<1x128xf32>
    %142 = arith.mulf %40, %141 : vector<1x128xf32>
    %143 = arith.addf %139, %142 : vector<1x128xf32>
    %c15 = arith.constant 15 : index
    %144 = memref.load %arg3[%c15] : memref<100xf32, #tpu.memory_space<smem>>
    %145 = vector.broadcast %144 : f32 to vector<1x128xf32>
    %146 = arith.mulf %48, %145 : vector<1x128xf32>
    %147 = arith.addf %143, %146 : vector<1x128xf32>
    %c16 = arith.constant 16 : index
    %148 = memref.load %arg3[%c16] : memref<100xf32, #tpu.memory_space<smem>>
    %149 = vector.broadcast %148 : f32 to vector<1x128xf32>
    %150 = arith.mulf %56, %149 : vector<1x128xf32>
    %151 = arith.addf %147, %150 : vector<1x128xf32>
    %c17 = arith.constant 17 : index
    %152 = memref.load %arg3[%c17] : memref<100xf32, #tpu.memory_space<smem>>
    %153 = vector.broadcast %152 : f32 to vector<1x128xf32>
    %154 = arith.mulf %64, %153 : vector<1x128xf32>
    %155 = arith.addf %151, %154 : vector<1x128xf32>
    %c18 = arith.constant 18 : index
    %156 = memref.load %arg3[%c18] : memref<100xf32, #tpu.memory_space<smem>>
    %157 = vector.broadcast %156 : f32 to vector<1x128xf32>
    %158 = arith.mulf %72, %157 : vector<1x128xf32>
    %159 = arith.addf %155, %158 : vector<1x128xf32>
    %c19 = arith.constant 19 : index
    %160 = memref.load %arg3[%c19] : memref<100xf32, #tpu.memory_space<smem>>
    %161 = vector.broadcast %160 : f32 to vector<1x128xf32>
    %162 = arith.mulf %80, %161 : vector<1x128xf32>
    %163 = arith.addf %159, %162 : vector<1x128xf32>
    %c1_33 = arith.constant 1 : index
    %164 = memref.load %arg4[%c1_33] : memref<10xf32, #tpu.memory_space<smem>>
    %165 = vector.broadcast %164 : f32 to vector<1x128xf32>
    %166 = arith.addf %163, %165 : vector<1x128xf32>
    %cst_34 = arith.constant 0.000000e+00 : f32
    %167 = vector.broadcast %cst_34 : f32 to vector<1x128xf32>
    %168 = arith.maximumf %166, %167 : vector<1x128xf32>
    %c20 = arith.constant 20 : index
    %169 = memref.load %arg3[%c20] : memref<100xf32, #tpu.memory_space<smem>>
    %170 = vector.broadcast %169 : f32 to vector<1x128xf32>
    %171 = arith.mulf %8, %170 : vector<1x128xf32>
    %c21 = arith.constant 21 : index
    %172 = memref.load %arg3[%c21] : memref<100xf32, #tpu.memory_space<smem>>
    %173 = vector.broadcast %172 : f32 to vector<1x128xf32>
    %174 = arith.mulf %16, %173 : vector<1x128xf32>
    %175 = arith.addf %171, %174 : vector<1x128xf32>
    %c22 = arith.constant 22 : index
    %176 = memref.load %arg3[%c22] : memref<100xf32, #tpu.memory_space<smem>>
    %177 = vector.broadcast %176 : f32 to vector<1x128xf32>
    %178 = arith.mulf %24, %177 : vector<1x128xf32>
    %179 = arith.addf %175, %178 : vector<1x128xf32>
    %c23 = arith.constant 23 : index
    %180 = memref.load %arg3[%c23] : memref<100xf32, #tpu.memory_space<smem>>
    %181 = vector.broadcast %180 : f32 to vector<1x128xf32>
    %182 = arith.mulf %32, %181 : vector<1x128xf32>
    %183 = arith.addf %179, %182 : vector<1x128xf32>
    %c24 = arith.constant 24 : index
    %184 = memref.load %arg3[%c24] : memref<100xf32, #tpu.memory_space<smem>>
    %185 = vector.broadcast %184 : f32 to vector<1x128xf32>
    %186 = arith.mulf %40, %185 : vector<1x128xf32>
    %187 = arith.addf %183, %186 : vector<1x128xf32>
    %c25 = arith.constant 25 : index
    %188 = memref.load %arg3[%c25] : memref<100xf32, #tpu.memory_space<smem>>
    %189 = vector.broadcast %188 : f32 to vector<1x128xf32>
    %190 = arith.mulf %48, %189 : vector<1x128xf32>
    %191 = arith.addf %187, %190 : vector<1x128xf32>
    %c26 = arith.constant 26 : index
    %192 = memref.load %arg3[%c26] : memref<100xf32, #tpu.memory_space<smem>>
    %193 = vector.broadcast %192 : f32 to vector<1x128xf32>
    %194 = arith.mulf %56, %193 : vector<1x128xf32>
    %195 = arith.addf %191, %194 : vector<1x128xf32>
    %c27 = arith.constant 27 : index
    %196 = memref.load %arg3[%c27] : memref<100xf32, #tpu.memory_space<smem>>
    %197 = vector.broadcast %196 : f32 to vector<1x128xf32>
    %198 = arith.mulf %64, %197 : vector<1x128xf32>
    %199 = arith.addf %195, %198 : vector<1x128xf32>
    %c28 = arith.constant 28 : index
    %200 = memref.load %arg3[%c28] : memref<100xf32, #tpu.memory_space<smem>>
    %201 = vector.broadcast %200 : f32 to vector<1x128xf32>
    %202 = arith.mulf %72, %201 : vector<1x128xf32>
    %203 = arith.addf %199, %202 : vector<1x128xf32>
    %c29 = arith.constant 29 : index
    %204 = memref.load %arg3[%c29] : memref<100xf32, #tpu.memory_space<smem>>
    %205 = vector.broadcast %204 : f32 to vector<1x128xf32>
    %206 = arith.mulf %80, %205 : vector<1x128xf32>
    %207 = arith.addf %203, %206 : vector<1x128xf32>
    %c2_35 = arith.constant 2 : index
    %208 = memref.load %arg4[%c2_35] : memref<10xf32, #tpu.memory_space<smem>>
    %209 = vector.broadcast %208 : f32 to vector<1x128xf32>
    %210 = arith.addf %207, %209 : vector<1x128xf32>
    %cst_36 = arith.constant 0.000000e+00 : f32
    %211 = vector.broadcast %cst_36 : f32 to vector<1x128xf32>
    %212 = arith.maximumf %210, %211 : vector<1x128xf32>
    %c30 = arith.constant 30 : index
    %213 = memref.load %arg3[%c30] : memref<100xf32, #tpu.memory_space<smem>>
    %214 = vector.broadcast %213 : f32 to vector<1x128xf32>
    %215 = arith.mulf %8, %214 : vector<1x128xf32>
    %c31 = arith.constant 31 : index
    %216 = memref.load %arg3[%c31] : memref<100xf32, #tpu.memory_space<smem>>
    %217 = vector.broadcast %216 : f32 to vector<1x128xf32>
    %218 = arith.mulf %16, %217 : vector<1x128xf32>
    %219 = arith.addf %215, %218 : vector<1x128xf32>
    %c32 = arith.constant 32 : index
    %220 = memref.load %arg3[%c32] : memref<100xf32, #tpu.memory_space<smem>>
    %221 = vector.broadcast %220 : f32 to vector<1x128xf32>
    %222 = arith.mulf %24, %221 : vector<1x128xf32>
    %223 = arith.addf %219, %222 : vector<1x128xf32>
    %c33 = arith.constant 33 : index
    %224 = memref.load %arg3[%c33] : memref<100xf32, #tpu.memory_space<smem>>
    %225 = vector.broadcast %224 : f32 to vector<1x128xf32>
    %226 = arith.mulf %32, %225 : vector<1x128xf32>
    %227 = arith.addf %223, %226 : vector<1x128xf32>
    %c34 = arith.constant 34 : index
    %228 = memref.load %arg3[%c34] : memref<100xf32, #tpu.memory_space<smem>>
    %229 = vector.broadcast %228 : f32 to vector<1x128xf32>
    %230 = arith.mulf %40, %229 : vector<1x128xf32>
    %231 = arith.addf %227, %230 : vector<1x128xf32>
    %c35 = arith.constant 35 : index
    %232 = memref.load %arg3[%c35] : memref<100xf32, #tpu.memory_space<smem>>
    %233 = vector.broadcast %232 : f32 to vector<1x128xf32>
    %234 = arith.mulf %48, %233 : vector<1x128xf32>
    %235 = arith.addf %231, %234 : vector<1x128xf32>
    %c36 = arith.constant 36 : index
    %236 = memref.load %arg3[%c36] : memref<100xf32, #tpu.memory_space<smem>>
    %237 = vector.broadcast %236 : f32 to vector<1x128xf32>
    %238 = arith.mulf %56, %237 : vector<1x128xf32>
    %239 = arith.addf %235, %238 : vector<1x128xf32>
    %c37 = arith.constant 37 : index
    %240 = memref.load %arg3[%c37] : memref<100xf32, #tpu.memory_space<smem>>
    %241 = vector.broadcast %240 : f32 to vector<1x128xf32>
    %242 = arith.mulf %64, %241 : vector<1x128xf32>
    %243 = arith.addf %239, %242 : vector<1x128xf32>
    %c38 = arith.constant 38 : index
    %244 = memref.load %arg3[%c38] : memref<100xf32, #tpu.memory_space<smem>>
    %245 = vector.broadcast %244 : f32 to vector<1x128xf32>
    %246 = arith.mulf %72, %245 : vector<1x128xf32>
    %247 = arith.addf %243, %246 : vector<1x128xf32>
    %c39 = arith.constant 39 : index
    %248 = memref.load %arg3[%c39] : memref<100xf32, #tpu.memory_space<smem>>
    %249 = vector.broadcast %248 : f32 to vector<1x128xf32>
    %250 = arith.mulf %80, %249 : vector<1x128xf32>
    %251 = arith.addf %247, %250 : vector<1x128xf32>
    %c3_37 = arith.constant 3 : index
    %252 = memref.load %arg4[%c3_37] : memref<10xf32, #tpu.memory_space<smem>>
    %253 = vector.broadcast %252 : f32 to vector<1x128xf32>
    %254 = arith.addf %251, %253 : vector<1x128xf32>
    %cst_38 = arith.constant 0.000000e+00 : f32
    %255 = vector.broadcast %cst_38 : f32 to vector<1x128xf32>
    %256 = arith.maximumf %254, %255 : vector<1x128xf32>
    %c40 = arith.constant 40 : index
    %257 = memref.load %arg3[%c40] : memref<100xf32, #tpu.memory_space<smem>>
    %258 = vector.broadcast %257 : f32 to vector<1x128xf32>
    %259 = arith.mulf %8, %258 : vector<1x128xf32>
    %c41 = arith.constant 41 : index
    %260 = memref.load %arg3[%c41] : memref<100xf32, #tpu.memory_space<smem>>
    %261 = vector.broadcast %260 : f32 to vector<1x128xf32>
    %262 = arith.mulf %16, %261 : vector<1x128xf32>
    %263 = arith.addf %259, %262 : vector<1x128xf32>
    %c42 = arith.constant 42 : index
    %264 = memref.load %arg3[%c42] : memref<100xf32, #tpu.memory_space<smem>>
    %265 = vector.broadcast %264 : f32 to vector<1x128xf32>
    %266 = arith.mulf %24, %265 : vector<1x128xf32>
    %267 = arith.addf %263, %266 : vector<1x128xf32>
    %c43 = arith.constant 43 : index
    %268 = memref.load %arg3[%c43] : memref<100xf32, #tpu.memory_space<smem>>
    %269 = vector.broadcast %268 : f32 to vector<1x128xf32>
    %270 = arith.mulf %32, %269 : vector<1x128xf32>
    %271 = arith.addf %267, %270 : vector<1x128xf32>
    %c44 = arith.constant 44 : index
    %272 = memref.load %arg3[%c44] : memref<100xf32, #tpu.memory_space<smem>>
    %273 = vector.broadcast %272 : f32 to vector<1x128xf32>
    %274 = arith.mulf %40, %273 : vector<1x128xf32>
    %275 = arith.addf %271, %274 : vector<1x128xf32>
    %c45 = arith.constant 45 : index
    %276 = memref.load %arg3[%c45] : memref<100xf32, #tpu.memory_space<smem>>
    %277 = vector.broadcast %276 : f32 to vector<1x128xf32>
    %278 = arith.mulf %48, %277 : vector<1x128xf32>
    %279 = arith.addf %275, %278 : vector<1x128xf32>
    %c46 = arith.constant 46 : index
    %280 = memref.load %arg3[%c46] : memref<100xf32, #tpu.memory_space<smem>>
    %281 = vector.broadcast %280 : f32 to vector<1x128xf32>
    %282 = arith.mulf %56, %281 : vector<1x128xf32>
    %283 = arith.addf %279, %282 : vector<1x128xf32>
    %c47 = arith.constant 47 : index
    %284 = memref.load %arg3[%c47] : memref<100xf32, #tpu.memory_space<smem>>
    %285 = vector.broadcast %284 : f32 to vector<1x128xf32>
    %286 = arith.mulf %64, %285 : vector<1x128xf32>
    %287 = arith.addf %283, %286 : vector<1x128xf32>
    %c48 = arith.constant 48 : index
    %288 = memref.load %arg3[%c48] : memref<100xf32, #tpu.memory_space<smem>>
    %289 = vector.broadcast %288 : f32 to vector<1x128xf32>
    %290 = arith.mulf %72, %289 : vector<1x128xf32>
    %291 = arith.addf %287, %290 : vector<1x128xf32>
    %c49 = arith.constant 49 : index
    %292 = memref.load %arg3[%c49] : memref<100xf32, #tpu.memory_space<smem>>
    %293 = vector.broadcast %292 : f32 to vector<1x128xf32>
    %294 = arith.mulf %80, %293 : vector<1x128xf32>
    %295 = arith.addf %291, %294 : vector<1x128xf32>
    %c4_39 = arith.constant 4 : index
    %296 = memref.load %arg4[%c4_39] : memref<10xf32, #tpu.memory_space<smem>>
    %297 = vector.broadcast %296 : f32 to vector<1x128xf32>
    %298 = arith.addf %295, %297 : vector<1x128xf32>
    %cst_40 = arith.constant 0.000000e+00 : f32
    %299 = vector.broadcast %cst_40 : f32 to vector<1x128xf32>
    %300 = arith.maximumf %298, %299 : vector<1x128xf32>
    %c50 = arith.constant 50 : index
    %301 = memref.load %arg3[%c50] : memref<100xf32, #tpu.memory_space<smem>>
    %302 = vector.broadcast %301 : f32 to vector<1x128xf32>
    %303 = arith.mulf %8, %302 : vector<1x128xf32>
    %c51 = arith.constant 51 : index
    %304 = memref.load %arg3[%c51] : memref<100xf32, #tpu.memory_space<smem>>
    %305 = vector.broadcast %304 : f32 to vector<1x128xf32>
    %306 = arith.mulf %16, %305 : vector<1x128xf32>
    %307 = arith.addf %303, %306 : vector<1x128xf32>
    %c52 = arith.constant 52 : index
    %308 = memref.load %arg3[%c52] : memref<100xf32, #tpu.memory_space<smem>>
    %309 = vector.broadcast %308 : f32 to vector<1x128xf32>
    %310 = arith.mulf %24, %309 : vector<1x128xf32>
    %311 = arith.addf %307, %310 : vector<1x128xf32>
    %c53 = arith.constant 53 : index
    %312 = memref.load %arg3[%c53] : memref<100xf32, #tpu.memory_space<smem>>
    %313 = vector.broadcast %312 : f32 to vector<1x128xf32>
    %314 = arith.mulf %32, %313 : vector<1x128xf32>
    %315 = arith.addf %311, %314 : vector<1x128xf32>
    %c54 = arith.constant 54 : index
    %316 = memref.load %arg3[%c54] : memref<100xf32, #tpu.memory_space<smem>>
    %317 = vector.broadcast %316 : f32 to vector<1x128xf32>
    %318 = arith.mulf %40, %317 : vector<1x128xf32>
    %319 = arith.addf %315, %318 : vector<1x128xf32>
    %c55 = arith.constant 55 : index
    %320 = memref.load %arg3[%c55] : memref<100xf32, #tpu.memory_space<smem>>
    %321 = vector.broadcast %320 : f32 to vector<1x128xf32>
    %322 = arith.mulf %48, %321 : vector<1x128xf32>
    %323 = arith.addf %319, %322 : vector<1x128xf32>
    %c56 = arith.constant 56 : index
    %324 = memref.load %arg3[%c56] : memref<100xf32, #tpu.memory_space<smem>>
    %325 = vector.broadcast %324 : f32 to vector<1x128xf32>
    %326 = arith.mulf %56, %325 : vector<1x128xf32>
    %327 = arith.addf %323, %326 : vector<1x128xf32>
    %c57 = arith.constant 57 : index
    %328 = memref.load %arg3[%c57] : memref<100xf32, #tpu.memory_space<smem>>
    %329 = vector.broadcast %328 : f32 to vector<1x128xf32>
    %330 = arith.mulf %64, %329 : vector<1x128xf32>
    %331 = arith.addf %327, %330 : vector<1x128xf32>
    %c58 = arith.constant 58 : index
    %332 = memref.load %arg3[%c58] : memref<100xf32, #tpu.memory_space<smem>>
    %333 = vector.broadcast %332 : f32 to vector<1x128xf32>
    %334 = arith.mulf %72, %333 : vector<1x128xf32>
    %335 = arith.addf %331, %334 : vector<1x128xf32>
    %c59 = arith.constant 59 : index
    %336 = memref.load %arg3[%c59] : memref<100xf32, #tpu.memory_space<smem>>
    %337 = vector.broadcast %336 : f32 to vector<1x128xf32>
    %338 = arith.mulf %80, %337 : vector<1x128xf32>
    %339 = arith.addf %335, %338 : vector<1x128xf32>
    %c5_41 = arith.constant 5 : index
    %340 = memref.load %arg4[%c5_41] : memref<10xf32, #tpu.memory_space<smem>>
    %341 = vector.broadcast %340 : f32 to vector<1x128xf32>
    %342 = arith.addf %339, %341 : vector<1x128xf32>
    %cst_42 = arith.constant 0.000000e+00 : f32
    %343 = vector.broadcast %cst_42 : f32 to vector<1x128xf32>
    %344 = arith.maximumf %342, %343 : vector<1x128xf32>
    %c60 = arith.constant 60 : index
    %345 = memref.load %arg3[%c60] : memref<100xf32, #tpu.memory_space<smem>>
    %346 = vector.broadcast %345 : f32 to vector<1x128xf32>
    %347 = arith.mulf %8, %346 : vector<1x128xf32>
    %c61 = arith.constant 61 : index
    %348 = memref.load %arg3[%c61] : memref<100xf32, #tpu.memory_space<smem>>
    %349 = vector.broadcast %348 : f32 to vector<1x128xf32>
    %350 = arith.mulf %16, %349 : vector<1x128xf32>
    %351 = arith.addf %347, %350 : vector<1x128xf32>
    %c62 = arith.constant 62 : index
    %352 = memref.load %arg3[%c62] : memref<100xf32, #tpu.memory_space<smem>>
    %353 = vector.broadcast %352 : f32 to vector<1x128xf32>
    %354 = arith.mulf %24, %353 : vector<1x128xf32>
    %355 = arith.addf %351, %354 : vector<1x128xf32>
    %c63 = arith.constant 63 : index
    %356 = memref.load %arg3[%c63] : memref<100xf32, #tpu.memory_space<smem>>
    %357 = vector.broadcast %356 : f32 to vector<1x128xf32>
    %358 = arith.mulf %32, %357 : vector<1x128xf32>
    %359 = arith.addf %355, %358 : vector<1x128xf32>
    %c64 = arith.constant 64 : index
    %360 = memref.load %arg3[%c64] : memref<100xf32, #tpu.memory_space<smem>>
    %361 = vector.broadcast %360 : f32 to vector<1x128xf32>
    %362 = arith.mulf %40, %361 : vector<1x128xf32>
    %363 = arith.addf %359, %362 : vector<1x128xf32>
    %c65 = arith.constant 65 : index
    %364 = memref.load %arg3[%c65] : memref<100xf32, #tpu.memory_space<smem>>
    %365 = vector.broadcast %364 : f32 to vector<1x128xf32>
    %366 = arith.mulf %48, %365 : vector<1x128xf32>
    %367 = arith.addf %363, %366 : vector<1x128xf32>
    %c66 = arith.constant 66 : index
    %368 = memref.load %arg3[%c66] : memref<100xf32, #tpu.memory_space<smem>>
    %369 = vector.broadcast %368 : f32 to vector<1x128xf32>
    %370 = arith.mulf %56, %369 : vector<1x128xf32>
    %371 = arith.addf %367, %370 : vector<1x128xf32>
    %c67 = arith.constant 67 : index
    %372 = memref.load %arg3[%c67] : memref<100xf32, #tpu.memory_space<smem>>
    %373 = vector.broadcast %372 : f32 to vector<1x128xf32>
    %374 = arith.mulf %64, %373 : vector<1x128xf32>
    %375 = arith.addf %371, %374 : vector<1x128xf32>
    %c68 = arith.constant 68 : index
    %376 = memref.load %arg3[%c68] : memref<100xf32, #tpu.memory_space<smem>>
    %377 = vector.broadcast %376 : f32 to vector<1x128xf32>
    %378 = arith.mulf %72, %377 : vector<1x128xf32>
    %379 = arith.addf %375, %378 : vector<1x128xf32>
    %c69 = arith.constant 69 : index
    %380 = memref.load %arg3[%c69] : memref<100xf32, #tpu.memory_space<smem>>
    %381 = vector.broadcast %380 : f32 to vector<1x128xf32>
    %382 = arith.mulf %80, %381 : vector<1x128xf32>
    %383 = arith.addf %379, %382 : vector<1x128xf32>
    %c6_43 = arith.constant 6 : index
    %384 = memref.load %arg4[%c6_43] : memref<10xf32, #tpu.memory_space<smem>>
    %385 = vector.broadcast %384 : f32 to vector<1x128xf32>
    %386 = arith.addf %383, %385 : vector<1x128xf32>
    %cst_44 = arith.constant 0.000000e+00 : f32
    %387 = vector.broadcast %cst_44 : f32 to vector<1x128xf32>
    %388 = arith.maximumf %386, %387 : vector<1x128xf32>
    %c70 = arith.constant 70 : index
    %389 = memref.load %arg3[%c70] : memref<100xf32, #tpu.memory_space<smem>>
    %390 = vector.broadcast %389 : f32 to vector<1x128xf32>
    %391 = arith.mulf %8, %390 : vector<1x128xf32>
    %c71 = arith.constant 71 : index
    %392 = memref.load %arg3[%c71] : memref<100xf32, #tpu.memory_space<smem>>
    %393 = vector.broadcast %392 : f32 to vector<1x128xf32>
    %394 = arith.mulf %16, %393 : vector<1x128xf32>
    %395 = arith.addf %391, %394 : vector<1x128xf32>
    %c72 = arith.constant 72 : index
    %396 = memref.load %arg3[%c72] : memref<100xf32, #tpu.memory_space<smem>>
    %397 = vector.broadcast %396 : f32 to vector<1x128xf32>
    %398 = arith.mulf %24, %397 : vector<1x128xf32>
    %399 = arith.addf %395, %398 : vector<1x128xf32>
    %c73 = arith.constant 73 : index
    %400 = memref.load %arg3[%c73] : memref<100xf32, #tpu.memory_space<smem>>
    %401 = vector.broadcast %400 : f32 to vector<1x128xf32>
    %402 = arith.mulf %32, %401 : vector<1x128xf32>
    %403 = arith.addf %399, %402 : vector<1x128xf32>
    %c74 = arith.constant 74 : index
    %404 = memref.load %arg3[%c74] : memref<100xf32, #tpu.memory_space<smem>>
    %405 = vector.broadcast %404 : f32 to vector<1x128xf32>
    %406 = arith.mulf %40, %405 : vector<1x128xf32>
    %407 = arith.addf %403, %406 : vector<1x128xf32>
    %c75 = arith.constant 75 : index
    %408 = memref.load %arg3[%c75] : memref<100xf32, #tpu.memory_space<smem>>
    %409 = vector.broadcast %408 : f32 to vector<1x128xf32>
    %410 = arith.mulf %48, %409 : vector<1x128xf32>
    %411 = arith.addf %407, %410 : vector<1x128xf32>
    %c76 = arith.constant 76 : index
    %412 = memref.load %arg3[%c76] : memref<100xf32, #tpu.memory_space<smem>>
    %413 = vector.broadcast %412 : f32 to vector<1x128xf32>
    %414 = arith.mulf %56, %413 : vector<1x128xf32>
    %415 = arith.addf %411, %414 : vector<1x128xf32>
    %c77 = arith.constant 77 : index
    %416 = memref.load %arg3[%c77] : memref<100xf32, #tpu.memory_space<smem>>
    %417 = vector.broadcast %416 : f32 to vector<1x128xf32>
    %418 = arith.mulf %64, %417 : vector<1x128xf32>
    %419 = arith.addf %415, %418 : vector<1x128xf32>
    %c78 = arith.constant 78 : index
    %420 = memref.load %arg3[%c78] : memref<100xf32, #tpu.memory_space<smem>>
    %421 = vector.broadcast %420 : f32 to vector<1x128xf32>
    %422 = arith.mulf %72, %421 : vector<1x128xf32>
    %423 = arith.addf %419, %422 : vector<1x128xf32>
    %c79 = arith.constant 79 : index
    %424 = memref.load %arg3[%c79] : memref<100xf32, #tpu.memory_space<smem>>
    %425 = vector.broadcast %424 : f32 to vector<1x128xf32>
    %426 = arith.mulf %80, %425 : vector<1x128xf32>
    %427 = arith.addf %423, %426 : vector<1x128xf32>
    %c7_45 = arith.constant 7 : index
    %428 = memref.load %arg4[%c7_45] : memref<10xf32, #tpu.memory_space<smem>>
    %429 = vector.broadcast %428 : f32 to vector<1x128xf32>
    %430 = arith.addf %427, %429 : vector<1x128xf32>
    %cst_46 = arith.constant 0.000000e+00 : f32
    %431 = vector.broadcast %cst_46 : f32 to vector<1x128xf32>
    %432 = arith.maximumf %430, %431 : vector<1x128xf32>
    %c80 = arith.constant 80 : index
    %433 = memref.load %arg3[%c80] : memref<100xf32, #tpu.memory_space<smem>>
    %434 = vector.broadcast %433 : f32 to vector<1x128xf32>
    %435 = arith.mulf %8, %434 : vector<1x128xf32>
    %c81 = arith.constant 81 : index
    %436 = memref.load %arg3[%c81] : memref<100xf32, #tpu.memory_space<smem>>
    %437 = vector.broadcast %436 : f32 to vector<1x128xf32>
    %438 = arith.mulf %16, %437 : vector<1x128xf32>
    %439 = arith.addf %435, %438 : vector<1x128xf32>
    %c82 = arith.constant 82 : index
    %440 = memref.load %arg3[%c82] : memref<100xf32, #tpu.memory_space<smem>>
    %441 = vector.broadcast %440 : f32 to vector<1x128xf32>
    %442 = arith.mulf %24, %441 : vector<1x128xf32>
    %443 = arith.addf %439, %442 : vector<1x128xf32>
    %c83 = arith.constant 83 : index
    %444 = memref.load %arg3[%c83] : memref<100xf32, #tpu.memory_space<smem>>
    %445 = vector.broadcast %444 : f32 to vector<1x128xf32>
    %446 = arith.mulf %32, %445 : vector<1x128xf32>
    %447 = arith.addf %443, %446 : vector<1x128xf32>
    %c84 = arith.constant 84 : index
    %448 = memref.load %arg3[%c84] : memref<100xf32, #tpu.memory_space<smem>>
    %449 = vector.broadcast %448 : f32 to vector<1x128xf32>
    %450 = arith.mulf %40, %449 : vector<1x128xf32>
    %451 = arith.addf %447, %450 : vector<1x128xf32>
    %c85 = arith.constant 85 : index
    %452 = memref.load %arg3[%c85] : memref<100xf32, #tpu.memory_space<smem>>
    %453 = vector.broadcast %452 : f32 to vector<1x128xf32>
    %454 = arith.mulf %48, %453 : vector<1x128xf32>
    %455 = arith.addf %451, %454 : vector<1x128xf32>
    %c86 = arith.constant 86 : index
    %456 = memref.load %arg3[%c86] : memref<100xf32, #tpu.memory_space<smem>>
    %457 = vector.broadcast %456 : f32 to vector<1x128xf32>
    %458 = arith.mulf %56, %457 : vector<1x128xf32>
    %459 = arith.addf %455, %458 : vector<1x128xf32>
    %c87 = arith.constant 87 : index
    %460 = memref.load %arg3[%c87] : memref<100xf32, #tpu.memory_space<smem>>
    %461 = vector.broadcast %460 : f32 to vector<1x128xf32>
    %462 = arith.mulf %64, %461 : vector<1x128xf32>
    %463 = arith.addf %459, %462 : vector<1x128xf32>
    %c88 = arith.constant 88 : index
    %464 = memref.load %arg3[%c88] : memref<100xf32, #tpu.memory_space<smem>>
    %465 = vector.broadcast %464 : f32 to vector<1x128xf32>
    %466 = arith.mulf %72, %465 : vector<1x128xf32>
    %467 = arith.addf %463, %466 : vector<1x128xf32>
    %c89 = arith.constant 89 : index
    %468 = memref.load %arg3[%c89] : memref<100xf32, #tpu.memory_space<smem>>
    %469 = vector.broadcast %468 : f32 to vector<1x128xf32>
    %470 = arith.mulf %80, %469 : vector<1x128xf32>
    %471 = arith.addf %467, %470 : vector<1x128xf32>
    %c8_47 = arith.constant 8 : index
    %472 = memref.load %arg4[%c8_47] : memref<10xf32, #tpu.memory_space<smem>>
    %473 = vector.broadcast %472 : f32 to vector<1x128xf32>
    %474 = arith.addf %471, %473 : vector<1x128xf32>
    %cst_48 = arith.constant 0.000000e+00 : f32
    %475 = vector.broadcast %cst_48 : f32 to vector<1x128xf32>
    %476 = arith.maximumf %474, %475 : vector<1x128xf32>
    %c90 = arith.constant 90 : index
    %477 = memref.load %arg3[%c90] : memref<100xf32, #tpu.memory_space<smem>>
    %478 = vector.broadcast %477 : f32 to vector<1x128xf32>
    %479 = arith.mulf %8, %478 : vector<1x128xf32>
    %c91 = arith.constant 91 : index
    %480 = memref.load %arg3[%c91] : memref<100xf32, #tpu.memory_space<smem>>
    %481 = vector.broadcast %480 : f32 to vector<1x128xf32>
    %482 = arith.mulf %16, %481 : vector<1x128xf32>
    %483 = arith.addf %479, %482 : vector<1x128xf32>
    %c92 = arith.constant 92 : index
    %484 = memref.load %arg3[%c92] : memref<100xf32, #tpu.memory_space<smem>>
    %485 = vector.broadcast %484 : f32 to vector<1x128xf32>
    %486 = arith.mulf %24, %485 : vector<1x128xf32>
    %487 = arith.addf %483, %486 : vector<1x128xf32>
    %c93 = arith.constant 93 : index
    %488 = memref.load %arg3[%c93] : memref<100xf32, #tpu.memory_space<smem>>
    %489 = vector.broadcast %488 : f32 to vector<1x128xf32>
    %490 = arith.mulf %32, %489 : vector<1x128xf32>
    %491 = arith.addf %487, %490 : vector<1x128xf32>
    %c94 = arith.constant 94 : index
    %492 = memref.load %arg3[%c94] : memref<100xf32, #tpu.memory_space<smem>>
    %493 = vector.broadcast %492 : f32 to vector<1x128xf32>
    %494 = arith.mulf %40, %493 : vector<1x128xf32>
    %495 = arith.addf %491, %494 : vector<1x128xf32>
    %c95 = arith.constant 95 : index
    %496 = memref.load %arg3[%c95] : memref<100xf32, #tpu.memory_space<smem>>
    %497 = vector.broadcast %496 : f32 to vector<1x128xf32>
    %498 = arith.mulf %48, %497 : vector<1x128xf32>
    %499 = arith.addf %495, %498 : vector<1x128xf32>
    %c96 = arith.constant 96 : index
    %500 = memref.load %arg3[%c96] : memref<100xf32, #tpu.memory_space<smem>>
    %501 = vector.broadcast %500 : f32 to vector<1x128xf32>
    %502 = arith.mulf %56, %501 : vector<1x128xf32>
    %503 = arith.addf %499, %502 : vector<1x128xf32>
    %c97 = arith.constant 97 : index
    %504 = memref.load %arg3[%c97] : memref<100xf32, #tpu.memory_space<smem>>
    %505 = vector.broadcast %504 : f32 to vector<1x128xf32>
    %506 = arith.mulf %64, %505 : vector<1x128xf32>
    %507 = arith.addf %503, %506 : vector<1x128xf32>
    %c98 = arith.constant 98 : index
    %508 = memref.load %arg3[%c98] : memref<100xf32, #tpu.memory_space<smem>>
    %509 = vector.broadcast %508 : f32 to vector<1x128xf32>
    %510 = arith.mulf %72, %509 : vector<1x128xf32>
    %511 = arith.addf %507, %510 : vector<1x128xf32>
    %c99 = arith.constant 99 : index
    %512 = memref.load %arg3[%c99] : memref<100xf32, #tpu.memory_space<smem>>
    %513 = vector.broadcast %512 : f32 to vector<1x128xf32>
    %514 = arith.mulf %80, %513 : vector<1x128xf32>
    %515 = arith.addf %511, %514 : vector<1x128xf32>
    %c9_49 = arith.constant 9 : index
    %516 = memref.load %arg4[%c9_49] : memref<10xf32, #tpu.memory_space<smem>>
    %517 = vector.broadcast %516 : f32 to vector<1x128xf32>
    %518 = arith.addf %515, %517 : vector<1x128xf32>
    %cst_50 = arith.constant 0.000000e+00 : f32
    %519 = vector.broadcast %cst_50 : f32 to vector<1x128xf32>
    %520 = arith.maximumf %518, %519 : vector<1x128xf32>
    %c0_51 = arith.constant 0 : index
    %521 = memref.load %arg5[%c0_51] : memref<10xf32, #tpu.memory_space<smem>>
    %522 = vector.broadcast %521 : f32 to vector<1x128xf32>
    %523 = arith.mulf %124, %522 : vector<1x128xf32>
    %c1_52 = arith.constant 1 : index
    %524 = memref.load %arg5[%c1_52] : memref<10xf32, #tpu.memory_space<smem>>
    %525 = vector.broadcast %524 : f32 to vector<1x128xf32>
    %526 = arith.mulf %168, %525 : vector<1x128xf32>
    %527 = arith.addf %523, %526 : vector<1x128xf32>
    %c2_53 = arith.constant 2 : index
    %528 = memref.load %arg5[%c2_53] : memref<10xf32, #tpu.memory_space<smem>>
    %529 = vector.broadcast %528 : f32 to vector<1x128xf32>
    %530 = arith.mulf %212, %529 : vector<1x128xf32>
    %531 = arith.addf %527, %530 : vector<1x128xf32>
    %c3_54 = arith.constant 3 : index
    %532 = memref.load %arg5[%c3_54] : memref<10xf32, #tpu.memory_space<smem>>
    %533 = vector.broadcast %532 : f32 to vector<1x128xf32>
    %534 = arith.mulf %256, %533 : vector<1x128xf32>
    %535 = arith.addf %531, %534 : vector<1x128xf32>
    %c4_55 = arith.constant 4 : index
    %536 = memref.load %arg5[%c4_55] : memref<10xf32, #tpu.memory_space<smem>>
    %537 = vector.broadcast %536 : f32 to vector<1x128xf32>
    %538 = arith.mulf %300, %537 : vector<1x128xf32>
    %539 = arith.addf %535, %538 : vector<1x128xf32>
    %c5_56 = arith.constant 5 : index
    %540 = memref.load %arg5[%c5_56] : memref<10xf32, #tpu.memory_space<smem>>
    %541 = vector.broadcast %540 : f32 to vector<1x128xf32>
    %542 = arith.mulf %344, %541 : vector<1x128xf32>
    %543 = arith.addf %539, %542 : vector<1x128xf32>
    %c6_57 = arith.constant 6 : index
    %544 = memref.load %arg5[%c6_57] : memref<10xf32, #tpu.memory_space<smem>>
    %545 = vector.broadcast %544 : f32 to vector<1x128xf32>
    %546 = arith.mulf %388, %545 : vector<1x128xf32>
    %547 = arith.addf %543, %546 : vector<1x128xf32>
    %c7_58 = arith.constant 7 : index
    %548 = memref.load %arg5[%c7_58] : memref<10xf32, #tpu.memory_space<smem>>
    %549 = vector.broadcast %548 : f32 to vector<1x128xf32>
    %550 = arith.mulf %432, %549 : vector<1x128xf32>
    %551 = arith.addf %547, %550 : vector<1x128xf32>
    %c8_59 = arith.constant 8 : index
    %552 = memref.load %arg5[%c8_59] : memref<10xf32, #tpu.memory_space<smem>>
    %553 = vector.broadcast %552 : f32 to vector<1x128xf32>
    %554 = arith.mulf %476, %553 : vector<1x128xf32>
    %555 = arith.addf %551, %554 : vector<1x128xf32>
    %c9_60 = arith.constant 9 : index
    %556 = memref.load %arg5[%c9_60] : memref<10xf32, #tpu.memory_space<smem>>
    %557 = vector.broadcast %556 : f32 to vector<1x128xf32>
    %558 = arith.mulf %520, %557 : vector<1x128xf32>
    %559 = arith.addf %555, %558 : vector<1x128xf32>
    %c0_61 = arith.constant 0 : index
    %560 = memref.load %arg6[%c0_61] : memref<1xf32, #tpu.memory_space<smem>>
    %561 = vector.broadcast %560 : f32 to vector<1x128xf32>
    %562 = arith.addf %559, %561 : vector<1x128xf32>
    %c0_62 = arith.constant 0 : index
    %c0_63 = arith.constant 0 : index
    %563 = vector.load %arg8[%c0_62, %c0_63] : memref<1x128xf32, #tpu.memory_space<vmem>>, vector<1x128xf32>
    tpu.vector_store %arg8[%c0_62, %c0_63], %562 {strides = array<i32>} : memref<1x128xf32, #tpu.memory_space<vmem>>, vector<1x128xf32>,
    return
  }
  func.func @transform_0(%arg0: i32) -> i32 {
    %c0_i32 = arith.constant 0 : i32
    %c0_i32_0 = arith.constant 0 : i32
    return %c0_i32 : i32
  }
  func.func @transform_1(%arg0: i32) -> i32 {
    %c0_i32 = arith.constant 0 : i32
    %c0_i32_0 = arith.constant 0 : i32
    return %c0_i32 : i32
  }
  func.func @transform_2(%arg0: i32) -> i32 {
    %c0_i32 = arith.constant 0 : i32
    %c0_i32_0 = arith.constant 0 : i32
    return %c0_i32 : i32
  }
  func.func @transform_3(%arg0: i32) -> i32 {
    %c0_i32 = arith.constant 0 : i32
    %c0_i32_0 = arith.constant 0 : i32
    return %c0_i32 : i32
  }
  func.func @transform_4(%arg0: i32) -> i32 {
    %c0_i32 = arith.constant 0 : i32
    %c0_i32_0 = arith.constant 0 : i32
    return %c0_i32 : i32
  }
  func.func @transform_5(%arg0: i32) -> i32 {
    %c0_i32 = arith.constant 0 : i32
    %c0_i32_0 = arith.constant 0 : i32
    return %c0_i32 : i32
  }
  func.func @transform_6(%arg0: i32) -> (i32, i32) {
    %c0_i32 = arith.constant 0 : i32
    %c0_i32_0 = arith.constant 0 : i32
    return %c0_i32, %arg0 : i32, i32
  }
  func.func @transform_7(%arg0: i32) -> (i32, i32) {
    %c0_i32 = arith.constant 0 : i32
    %c0_i32_0 = arith.constant 0 : i32
    return %c0_i32, %arg0 : i32, i32
  }
}

</mosaic_0001>

<bundles_post_ra>
// kernel: tpu_custom_call.1
= control target key start
LH: loop header
LB: loop body
LE: loop exit
PB: predicated region body
PF: predicated region fallthrough
CT: control target
= control target key end

     0   :  { %13 = vsyncpa [#allocation5], 0  ;;  %s1524_s0 = inlined_call_operand.vmem [shape: f32[10], index: 0, kind: input, shape index: {}]   ;;  %s1525_s1 = inlined_call_operand.vmem [shape: f32[10], index: 1, kind: input, shape index: {}]   ;;  %s1526_s2 = inlined_call_operand.vmem [shape: f32[100], index: 2, kind: input, shape index: {}]   ;;  %s1527_s3 = inlined_call_operand.vmem [shape: f32[10], index: 3, kind: input, shape index: {}]   ;;  %s1528_s4 = inlined_call_operand.vmem [shape: f32[10], index: 4, kind: input, shape index: {}]   ;;  %s1529_s5 = inlined_call_operand.<no memory space> [shape: f32[1], index: 5, kind: input, shape index: {}]   ;;  %s1530_s6 = inlined_call_operand.vmem [shape: f32[1,128], index: 6, kind: input, shape index: {}]   ;;  %s1531_s7 = inlined_call_operand.hbm [shape: f32[1,128], index: 7, kind: output, shape index: {}]  }
   0x1   :  { %14 = vsyncpa [#allocation7], 0 }
   0x2   :  { %15 = vsyncpa [#allocation10], 0  ;;  %s33_s26 = sshll.u32 %s1525_s1, 4  ;;  %s34_s26 = int_to_ptr.vmem [resolvable:$true] %s33_s26 }
   0x3   :  { %16 = vsyncpa [#allocation4], 0  ;;  %s53_s29 = sshll.u32 %s1527_s3, 4  ;;  %s789_s30 = scalar_lea.vmem %s34_s26, 16  ;;  %s54_s29 = int_to_ptr.vmem [resolvable:$true] %s53_s29 }
   0x4   :  { %p790_p0 = scmp.ne.s32.totalorder %s34_s26, %s789_s30  ;;  %p794_p1 = scmp.lt.s32.totalorder %s34_s26, %s34_s26 }
   0x5   :  { %p795_p2 = scmp.lt.s32.totalorder %s789_s30, %s789_s30 }
   0x7   :  { %p796_p3 = por %p795_p2, %p794_p1 }
   0x9   :  { %p797_p4 = pnand %p796_p3, %p790_p0 }
   0xb   :  { %800 = shalt.err (!%p797_p4)
}
   0xc   :  { %s879_s8 = smov [#allocation6]   ;;  %s801_s9 = scalar_lea.vmem %s54_s29, 16 }
   0xd   :  { %36 = dma.vmem_to_smem %s34_s26, 16, %s879_s8, [#allocation7]  }
   0xe   :  { %p802_p5 = scmp.ne.s32.totalorder %s54_s29, %s801_s9  ;;  %p806_p6 = scmp.lt.s32.totalorder %s54_s29, %s54_s29 }
   0xf   :  { %p807_p7 = scmp.lt.s32.totalorder %s801_s9, %s801_s9 }
  0x11   :  { %p808_p8 = por %p807_p7, %p806_p6 }
  0x13   :  { %p809_p9 = pnand %p808_p8, %p802_p5 }
  0x15   :  { %812 = shalt.err (!%p809_p9)
}
  0x16   :  { %s880_s1 = smov [#allocation9]   ;;  %s23_s11 = sshll.u32 %s1524_s0, 4  ;;  %s24_s11 = int_to_ptr.vmem [resolvable:$true] %s23_s11 }
  0x17   :  { %56 = dma.vmem_to_smem %s54_s29, 16, %s880_s1, [#allocation10]  }
  0x18   :  { %s43_s14 = sshll.u32 %s1526_s2, 4  ;;  %s813_s15 = scalar_lea.vmem %s24_s11, 16  ;;  %s44_s14 = int_to_ptr.vmem [resolvable:$true] %s43_s14 }
  0x19   :  { %p814_p10 = scmp.ne.s32.totalorder %s24_s11, %s813_s15  ;;  %p818_p11 = scmp.lt.s32.totalorder %s24_s11, %s24_s11 }
  0x1a   :  { %p819_p12 = scmp.lt.s32.totalorder %s813_s15, %s813_s15 }
  0x1c   :  { %p820_p13 = por %p819_p12, %p818_p11 }
  0x1e   :  { %p821_p0 = pnand %p820_p13, %p814_p10 }
  0x20   :  { %824 = shalt.err (!%p821_p0)
}
  0x21   :  { %s881_s16 = smov [#allocation3]   ;;  %s825_s17 = scalar_lea.vmem %s44_s14, 16 }
  0x22   :  { %26 = dma.vmem_to_smem %s24_s11, 16, %s881_s16, [#allocation5]  }
  0x23   :  { %p826_p1 = scmp.ne.s32.totalorder %s44_s14, %s825_s17  ;;  %p830_p2 = scmp.lt.s32.totalorder %s44_s14, %s44_s14 }
  0x24   :  { %p831_p3 = scmp.lt.s32.totalorder %s825_s17, %s825_s17 }
  0x26   :  { %p832_p4 = por %p831_p3, %p830_p2 }
  0x28   :  { %p833_p5 = pnand %p832_p4, %p826_p1 }
  0x2a   :  { %836 = shalt.err (!%p833_p5)
}
  0x2b   :  { %s882_s0 = smov [#allocation8]   ;;  %s63_s19 = sshll.u32 %s1528_s4, 4  ;;  %s64_s19 = int_to_ptr.vmem [resolvable:$true] %s63_s19 }
  0x2c   :  { %46 = dma.vmem_to_smem %s44_s14, 16, %s882_s0, [#allocation7]  }
  0x2d   :  { %s837_s20 = scalar_lea.vmem %s64_s19, 16  ;;  %p842_p7 = scmp.lt.s32.totalorder %s64_s19, %s64_s19 }
  0x2e   :  { %p838_p6 = scmp.ne.s32.totalorder %s64_s19, %s837_s20  ;;  %p843_p8 = scmp.lt.s32.totalorder %s837_s20, %s837_s20 }
  0x30   :  { %p844_p9 = por %p843_p8, %p842_p7 }
  0x32   :  { %p845_p10 = pnand %p844_p9, %p838_p6 }
  0x34   :  { %848 = shalt.err (!%p845_p10)
}
  0x35   :  { %s883_s21 = smov [#allocation11]  }
  0x36   :  { %66 = dma.vmem_to_smem %s64_s19, 16, %s883_s21, [#allocation10]  }
  0x37   :  { %871 = dma.done.wait [#allocation5], 16  }
  0x38   :  { %872 = vsyncadd [#allocation5], 4294967280 }
  0x39   :  { %873 = dma.done.wait [#allocation7], 32  }
  0x3a   :  { %874 = vsyncadd [#allocation7], 4294967264 }
  0x3b   :  { %875 = dma.done.wait [#allocation10], 32  }
  0x3c   :  { %876 = vsyncadd [#allocation10], 4294967264 }
  0x3d   :  { %86 = sfence }
  0x3e   :  { %s88_s22 = sld [smem:[#allocation3]]  ;;  %s648_s4 = sld [smem:[#allocation3 + $0x1]]  ;;  %v947_v0 = vld [vmem:[%s1530_s6] sm:$0x1] }
  0x3f   :  { %s91_s23 = sld [smem:[#allocation6]]  ;;  %s649_s24 = sld [smem:[#allocation6 + $0x1]] }
  0x40   :  { %s650_s25 = sld [smem:[#allocation3 + $0x2]]  ;;  %s652_s27 = sld [smem:[#allocation3 + $0x3]] }
  0x41   :  { %s940_s26 = sld [smem:[#allocation6 + $0x2]]  ;;  %s942_s28 = sld [smem:[#allocation6 + $0x3]] }
  0x42   :  { %s949_s8 = sld [smem:[#allocation3 + $0x4]]  ;;  %s953_s1 = sld [smem:[#allocation3 + $0x5]] }
  0x43   :  { %s951_s9 = sld [smem:[#allocation6 + $0x4]]  ;;  %s955_s3 = sld [smem:[#allocation6 + $0x5]] }
  0x44   :  { %v89_v1 = vstv %s88_s22  ;;  %s957_s10 = sld [smem:[#allocation3 + $0x6]]  ;;  %v96_v4 = vstv %s648_s4  ;;  %s962_s6 = sld [smem:[#allocation3 + $0x7]] }
  0x45   :  { %v92_v2 = vstv %s91_s23  ;;  %s959_s11 = sld [smem:[#allocation6 + $0x6]]  ;;  %v90_v3 = vmul.f32 %v89_v1, %v947_v0  ;;  %v99_v5 = vstv %s649_s24  ;;  %s964_s12 = sld [smem:[#allocation6 + $0x7]]  ;;  %v97_v6 = vmul.f32 %v96_v4, %v947_v0 }
  0x46   :  { %v103_v7 = vstv %s650_s25  ;;  %s968_s13 = sld [smem:[#allocation3 + $0x8]]  ;;  %v110_v11 = vstv %s652_s27  ;;  %s974_s15 = sld [smem:[#allocation3 + $0x9]] }
  0x47   :  { %v106_v8 = vstv %s940_s26  ;;  %s970_s14 = sld [smem:[#allocation6 + $0x8]]  ;;  %v93_v9 = vadd.f32 %v92_v2, %v90_v3  ;;  %v104_v10 = vmul.f32 %v103_v7, %v947_v0  ;;  %v113_v12 = vstv %s942_s28  ;;  %s976_s16 = sld [smem:[#allocation6 + $0x9]] }
  0x48   :  { %v100_v13 = vadd.f32 %v99_v5, %v97_v6  ;;  %v111_v14 = vmul.f32 %v110_v11, %v947_v0  ;;  %v117_v15 = vstv %s949_s8  ;;  %s981_s17 = sld [smem:[#allocation8]]  ;;  %s983_s0 = sld [smem:[#allocation8 + $0x1]]  ;;  %v124_v19 = vstv %s953_s1 }
  0x49   :  { %v120_v16 = vstv %s951_s9  ;;  %v107_v17 = vadd.f32 %v106_v8, %v104_v10  ;;  %v118_v18 = vmul.f32 %v117_v15, %v947_v0  ;;  %s987_s2 = sld [smem:[#allocation8 + $0x2]]  ;;  %s989_s18 = sld [smem:[#allocation8 + $0x3]]  ;;  %v125_v21 = vmul.f32 %v124_v19, %v947_v0 }
  0x4a   :  { %v114_v20 = vadd.f32 %v113_v12, %v111_v14  ;;  %v992_v22 = vmax.f32 %v93_v9, 0.0  ;;  %v127_v24 = vstv %s955_s3  ;;  %v131_v25 = vstv %s957_s10  ;;  %s996_s19 = sld [smem:[#allocation8 + $0x4]]  ;;  %s998_s20 = sld [smem:[#allocation8 + $0x5]] }
  0x4b   :  { %v121_v23 = vadd.f32 %v120_v16, %v118_v18  ;;  %v1000_v26 = vmax.f32 %v100_v13, 0.0  ;;  %v1002_v27 = vmax.f32 %v107_v17, 0.0  ;;  %v132_v28 = vmul.f32 %v131_v25, %v947_v0  ;;  %s1006_s21 = sld [smem:[#allocation8 + $0x6]]  ;;  %s1012_s22 = sld [smem:[#allocation8 + $0x7]] }
  0x4c   :  { %v138_v29 = vstv %s962_s6  ;;  %v134_v30 = vstv %s959_s11  ;;  %v141_v32 = vstv %s964_s12  ;;  %v145_v33 = vstv %s968_s13  ;;  %s1014_s23 = sld [smem:[#allocation8 + $0x8]]  ;;  %s1020_s4 = sld [smem:[#allocation8 + $0x9]] }
  0x4d   :  { %v139_v31 = vmul.f32 %v138_v29, %v947_v0  ;;  %v1016_v34 = vmax.f32 %v114_v20, 0.0  ;;  %v128_v35 = vadd.f32 %v127_v24, %v125_v21  ;;  %v146_v36 = vmul.f32 %v145_v33, %v947_v0  ;;  %s1022_s24 = sld [smem:[#allocation8 + $0xa]]  ;;  %s1029_s25 = sld [smem:[#allocation8 + $0xb]] }
  0x4e   :  { %v148_v37 = vstv %s970_s14  ;;  %v1024_v38 = vmax.f32 %v121_v23, 0.0  ;;  %v152_v39 = vstv %s974_s15  ;;  %v155_v40 = vstv %s976_s16  ;;  %s1031_s26 = sld [smem:[#allocation8 + $0xc]]  ;;  %s1035_s27 = sld [smem:[#allocation8 + $0xd]] }
  0x4f   :  { %v159_v41 = vstv %s981_s17  ;;  %v135_v42 = vadd.f32 %v134_v30, %v132_v28  ;;  %v142_v43 = vadd.f32 %v141_v32, %v139_v31  ;;  %v153_v44 = vmul.f32 %v152_v39, %v947_v0  ;;  %s1040_s28 = sld [smem:[#allocation8 + $0xe]]  ;;  %s1042_s29 = sld [smem:[#allocation8 + $0xf]] }
  0x50   :  { %v160_v45 = vmul.f32 %v159_v41, %v992_v22  ;;  %v149_v46 = vadd.f32 %v148_v37, %v146_v36  ;;  %v162_v47 = vstv %s983_s0  ;;  %v166_v48 = vstv %s987_s2  ;;  %s1048_s30 = sld [smem:[#allocation8 + $0x10]]  ;;  %s1057_s8 = sld [smem:[#allocation8 + $0x11]] }
  0x51   :  { %v170_v49 = vstv %s989_s18  ;;  %v1044_v50 = vmax.f32 %v128_v35, 0.0  ;;  %v156_v51 = vadd.f32 %v155_v40, %v153_v44  ;;  %v163_v52 = vmul.f32 %v162_v47, %v1000_v26  ;;  %s1065_s9 = sld [smem:[#allocation8 + $0x14]]  ;;  %s1067_s1 = sld [smem:[#allocation8 + $0x15]] }
  0x52   :  { %v167_v53 = vmul.f32 %v166_v48, %v1002_v27  ;;  %v174_v54 = vstv %s996_s19  ;;  %v178_v55 = vstv %s998_s20  ;;  %v1052_v56 = vmax.f32 %v135_v42, 0.0  ;;  %s1072_s3 = sld [smem:[#allocation8 + $0x12]]  ;;  %s1074_s10 = sld [smem:[#allocation8 + $0x13]] }
  0x53   :  { %v1054_v57 = vmax.f32 %v142_v43, 0.0  ;;  %v164_v58 = vadd.f32 %v163_v52, %v160_v45  ;;  %v171_v59 = vmul.f32 %v170_v49, %v1016_v34  ;;  %v1059_v60 = vmax.f32 %v149_v46, 0.0  ;;  %s1080_s11 = sld [smem:[#allocation8 + $0x16]]  ;;  %s1082_s6 = sld [smem:[#allocation8 + $0x17]] }
  0x54   :  { %v1061_v61 = vmax.f32 %v156_v51, 0.0  ;;  %v175_v62 = vmul.f32 %v174_v54, %v1024_v38  ;;  %v182_v63 = vstv %s1006_s21  ;;  %v179_v1 = vmul.f32 %v178_v55, %v1044_v50  ;;  %s1087_s12 = sld [smem:[#allocation8 + $0x18]]  ;;  %s1093_s13 = sld [smem:[#allocation8 + $0x19]] }
  0x55   :  { %v168_v0 = vadd.f32 %v167_v53, %v164_v58  ;;  %v186_v2 = vstv %s1012_s22  ;;  %v190_v3 = vstv %s1014_s23  ;;  %v194_v4 = vstv %s1020_s4  ;;  %s1095_s14 = sld [smem:[#allocation8 + $0x1a]]  ;;  %s1097_s15 = sld [smem:[#allocation9]] }
  0x56   :  { %v202_v5 = vstv %s1022_s24  ;;  %v205_v6 = vstv %s1029_s25  ;;  %v209_v7 = vstv %s1031_s26  ;;  %v183_v12 = vmul.f32 %v182_v63, %v1052_v56  ;;  %s1106_s16 = sld [smem:[#allocation8 + $0x1b]]  ;;  %s1108_s17 = sld [smem:[#allocation8 + $0x1c]] }
  0x57   :  { %v172_v8 = vadd.f32 %v171_v59, %v168_v0  ;;  %v203_v9 = vmul.f32 %v202_v5, %v992_v22  ;;  %v206_v10 = vmul.f32 %v205_v6, %v1000_v26  ;;  %v210_v11 = vmul.f32 %v209_v7, %v1002_v27  ;;  %s1114_s0 = sld [smem:[#allocation8 + $0x1d]]  ;;  %s1116_s2 = sld [smem:[#allocation8 + $0x1e]] }
  0x58   :  { %v213_v13 = vstv %s1035_s27  ;;  %v217_v14 = vstv %s1040_s28  ;;  %v221_v15 = vstv %s1042_s29  ;;  %v225_v19 = vstv %s1048_s30  ;;  %s1120_s18 = sld [smem:[#allocation8 + $0x1f]]  ;;  %s1126_s19 = sld [smem:[#allocation8 + $0x20]] }
  0x59   :  { %v176_v16 = vadd.f32 %v175_v62, %v172_v8  ;;  %v207_v17 = vadd.f32 %v206_v10, %v203_v9  ;;  %v214_v18 = vmul.f32 %v213_v13, %v1016_v34  ;;  %v187_v20 = vmul.f32 %v186_v2, %v1054_v57  ;;  %s1128_s20 = sld [smem:[#allocation8 + $0x21]]  ;;  %s1135_s21 = sld [smem:[#allocation8 + $0x22]] }
  0x5a   :  { %v191_v21 = vmul.f32 %v190_v3, %v1059_v60  ;;  %v195_v23 = vmul.f32 %v194_v4, %v1061_v61  ;;  %v218_v28 = vmul.f32 %v217_v14, %v1024_v38  ;;  %v222_v29 = vmul.f32 %v221_v15, %v1044_v50  ;;  %s1137_s22 = sld [smem:[#allocation8 + $0x23]]  ;;  %s1141_s23 = sld [smem:[#allocation9 + $0x1]] }
  0x5b   :  { %v180_v24 = vadd.f32 %v179_v1, %v176_v16  ;;  %v211_v25 = vadd.f32 %v210_v11, %v207_v17  ;;  %v226_v30 = vmul.f32 %v225_v19, %v1052_v56  ;;  %v229_v31 = vstv %s1057_s8  ;;  %s1143_s4 = sld [smem:[#allocation8 + $0x24]]  ;;  %s1148_s24 = sld [smem:[#allocation8 + $0x25]] }
  0x5c   :  { %v245_v32 = vstv %s1065_s9  ;;  %v248_v33 = vstv %s1067_s1  ;;  %v233_v37 = vstv %s1072_s3  ;;  %v237_v40 = vstv %s1074_s10  ;;  %s1153_s25 = sld [smem:[#allocation9 + $0x2]]  ;;  %s1158_s26 = sld [smem:[#allocation8 + $0x26]] }
  0x5d   :  { %v184_v35 = vadd.f32 %v183_v12, %v180_v24  ;;  %v215_v36 = vadd.f32 %v214_v18, %v211_v25  ;;  %v246_v39 = vmul.f32 %v245_v32, %v992_v22  ;;  %v249_v41 = vmul.f32 %v248_v33, %v1000_v26  ;;  %s1160_s27 = sld [smem:[#allocation8 + $0x27]]  ;;  %s1164_s28 = sld [smem:[#allocation8 + $0x28]] }
  0x5e   :  { %v252_v42 = vstv %s1080_s11  ;;  %v256_v43 = vstv %s1082_s6  ;;  %v260_v47 = vstv %s1087_s12  ;;  %v264_v51 = vstv %s1093_s13  ;;  %s1166_s29 = sld [smem:[#allocation8 + $0x29]]  ;;  %s1171_s30 = sld [smem:[#allocation8 + $0x2a]] }
  0x5f   :  { %v188_v44 = vadd.f32 %v187_v20, %v184_v35  ;;  %v219_v45 = vadd.f32 %v218_v28, %v215_v36  ;;  %v253_v46 = vmul.f32 %v252_v42, %v1002_v27  ;;  %v250_v48 = vadd.f32 %v249_v41, %v246_v39  ;;  %s1173_s8 = sld [smem:[#allocation8 + $0x2b]]  ;;  %s1178_s9 = sld [smem:[#allocation8 + $0x2c]] }
  0x60   :  { %v257_v49 = vmul.f32 %v256_v43, %v1016_v34  ;;  %v268_v52 = vstv %s1095_s14  ;;  %v198_v54 = vstv %s1097_s15  ;;  %v230_v58 = vmul.f32 %v229_v31, %v1054_v57  ;;  %s1180_s1 = sld [smem:[#allocation8 + $0x2d]]  ;;  %s1188_s3 = sld [smem:[#allocation8 + $0x2e]] }
  0x61   :  { %v192_v53 = vadd.f32 %v191_v21, %v188_v44  ;;  %v223_v55 = vadd.f32 %v222_v29, %v219_v45  ;;  %v234_v59 = vmul.f32 %v233_v37, %v1059_v60  ;;  %v238_v62 = vmul.f32 %v237_v40, %v1061_v61  ;;  %s1196_s10 = sld [smem:[#allocation8 + $0x2f]]  ;;  %s1200_s11 = sld [smem:[#allocation8 + $0x30]] }
  0x62   :  { %v254_v63 = vadd.f32 %v253_v46, %v250_v48  ;;  %v261_v0 = vmul.f32 %v260_v47, %v1024_v38  ;;  %v265_v2 = vmul.f32 %v264_v51, %v1044_v50  ;;  %v269_v3 = vmul.f32 %v268_v52, %v1052_v56  ;;  %s1202_s6 = sld [smem:[#allocation8 + $0x31]]  ;;  %s1208_s12 = sld [smem:[#allocation8 + $0x32]] }
  0x63   :  { %v227_v1 = vadd.f32 %v226_v30, %v223_v55  ;;  %v272_v4 = vstv %s1106_s16  ;;  %v276_v6 = vstv %s1108_s17  ;;  %v280_v7 = vstv %s1114_s0  ;;  %s1210_s13 = sld [smem:[#allocation8 + $0x33]]  ;;  %s1214_s14 = sld [smem:[#allocation8 + $0x34]] }
  0x64   :  { %v258_v5 = vadd.f32 %v257_v49, %v254_v63  ;;  %v288_v8 = vstv %s1116_s2  ;;  %v196_v9 = vadd.f32 %v195_v23, %v192_v53  ;;  %v291_v12 = vstv %s1120_s18  ;;  %s1216_s15 = sld [smem:[#allocation8 + $0x35]]  ;;  %s1222_s16 = sld [smem:[#allocation8 + $0x36]] }
  0x65   :  { %v231_v10 = vadd.f32 %v230_v58, %v227_v1  ;;  %v289_v11 = vmul.f32 %v288_v8, %v992_v22  ;;  %v292_v14 = vmul.f32 %v291_v12, %v1000_v26  ;;  %v295_v15 = vstv %s1126_s19  ;;  %s1224_s17 = sld [smem:[#allocation8 + $0x37]]  ;;  %s1230_s0 = sld [smem:[#allocation9 + $0x3]] }
  0x66   :  { %v262_v13 = vadd.f32 %v261_v0, %v258_v5  ;;  %v299_v16 = vstv %s1128_s20  ;;  %v273_v18 = vmul.f32 %v272_v4, %v1054_v57  ;;  %v296_v19 = vmul.f32 %v295_v15, %v1002_v27  ;;  %s1234_s2 = sld [smem:[#allocation8 + $0x38]]  ;;  %s1238_s18 = sld [smem:[#allocation9 + $0x4]] }
  0x67   :  { %v235_v17 = vadd.f32 %v234_v59, %v231_v10  ;;  %v300_v20 = vmul.f32 %v299_v16, %v1016_v34  ;;  %v293_v23 = vadd.f32 %v292_v14, %v289_v11  ;;  %v303_v24 = vstv %s1135_s21  ;;  %s1247_s19 = sld [smem:[#allocation8 + $0x39]]  ;;  %s1249_s20 = sld [smem:[#allocation8 + $0x3a]] }
  0x68   :  { %v266_v21 = vadd.f32 %v265_v2, %v262_v13  ;;  %v307_v25 = vstv %s1137_s22  ;;  %v241_v28 = vstv %s1141_s23  ;;  %v277_v29 = vmul.f32 %v276_v6, %v1059_v60  ;;  %s1255_s21 = sld [smem:[#allocation8 + $0x3c]]  ;;  %s1257_s22 = sld [smem:[#allocation8 + $0x3d]] }
  0x69   :  { %v281_v30 = vmul.f32 %v280_v7, %v1061_v61  ;;  %v311_v31 = vstv %s1143_s4  ;;  %v297_v33 = vadd.f32 %v296_v19, %v293_v23  ;;  %v304_v35 = vmul.f32 %v303_v24, %v1024_v38  ;;  %s1261_s23 = sld [smem:[#allocation8 + $0x3b]]  ;;  %s1263_s4 = sld [smem:[#allocation8 + $0x3e]] }
  0x6a   :  { %v270_v32 = vadd.f32 %v269_v3, %v266_v21  ;;  %v315_v36 = vstv %s1148_s24  ;;  %v1192_v37 = vadd.f32 %v198_v54, %v196_v9  ;;  %v239_v39 = vadd.f32 %v238_v62, %v235_v17  ;;  %s1269_s24 = sld [smem:[#allocation8 + $0x3f]] }
  0x6b   :  { %v284_v40 = vstv %s1153_s25  ;;  %v308_v41 = vmul.f32 %v307_v25, %v1044_v50  ;;  %v301_v43 = vadd.f32 %v300_v20, %v297_v33  ;;  %v312_v44 = vmul.f32 %v311_v31, %v1052_v56  ;;  %s1271_s25 = sld [smem:[#allocation8 + $0x40]] }
  0x6c   :  { %v274_v42 = vadd.f32 %v273_v18, %v270_v32  ;;  %v316_v45 = vmul.f32 %v315_v36, %v1054_v57  ;;  %v319_v46 = vstv %s1158_s26  ;;  %v323_v47 = vstv %s1160_s27  ;;  %s1274_s26 = sld [smem:[#allocation9 + $0x5]]  ;;  %s1280_s27 = sld [smem:[#allocation8 + $0x41]] }
  0x6d   :  { %v331_v48 = vstv %s1164_s28  ;;  %v334_v49 = vstv %s1166_s29  ;;  %v305_v52 = vadd.f32 %v304_v35, %v301_v43  ;;  %v338_v55 = vstv %s1171_s30  ;;  %s1282_s28 = sld [smem:[#allocation8 + $0x42]]  ;;  %s1290_s29 = sld [smem:[#allocation8 + $0x43]] }
  0x6e   :  { %v278_v51 = vadd.f32 %v277_v29, %v274_v42  ;;  %v332_v53 = vmul.f32 %v331_v48, %v992_v22  ;;  %v335_v54 = vmul.f32 %v334_v49, %v1000_v26  ;;  %v342_v58 = vstv %s1173_s8  ;;  %s1295_s30 = sld [smem:[#allocation8 + $0x44]]  ;;  %s1297_s8 = sld [smem:[#allocation8 + $0x45]] }
  0x6f   :  { %v346_v59 = vstv %s1178_s9  ;;  %v350_v62 = vstv %s1180_s1  ;;  %v309_v0 = vadd.f32 %v308_v41, %v305_v52  ;;  %v339_v2 = vmul.f32 %v338_v55, %v1002_v27  ;;  %s1303_s9 = sld [smem:[#allocation8 + $0x46]]  ;;  %s1305_s1 = sld [smem:[#allocation8 + $0x47]] }
  0x70   :  { %v282_v63 = vadd.f32 %v281_v30, %v278_v51  ;;  %v336_v1 = vadd.f32 %v335_v54, %v332_v53  ;;  %v200_v3 = vmax.f32 %v1192_v37, 0.0  ;;  %v1228_v4 = vadd.f32 %v241_v28, %v239_v39 }
  0x71   :  { %v343_v5 = vmul.f32 %v342_v58, %v1016_v34  ;;  %v354_v6 = vstv %s1188_s3  ;;  %v313_v7 = vadd.f32 %v312_v44, %v309_v0  ;;  %v320_v8 = vmul.f32 %v319_v46, %v1059_v60  ;;  %s1310_s3 = sld [smem:[#allocation8 + $0x48]] }
  0x72   :  { %v340_v9 = vadd.f32 %v339_v2, %v336_v1  ;;  %v347_v10 = vmul.f32 %v346_v59, %v1024_v38  ;;  %v1240_v11 = vadd.f32 %v284_v40, %v282_v63  ;;  %v324_v12 = vmul.f32 %v323_v47, %v1061_v61 }
  0x73   :  { %v351_v13 = vmul.f32 %v350_v62, %v1044_v50  ;;  %v358_v14 = vstv %s1196_s10  ;;  %v317_v15 = vadd.f32 %v316_v45, %v313_v7  ;;  %v355_v17 = vmul.f32 %v354_v6, %v1052_v56  ;;  %s1315_s10 = sld [smem:[#allocation8 + $0x49]] }
  0x74   :  { %v344_v16 = vadd.f32 %v343_v5, %v340_v9  ;;  %v362_v18 = vstv %s1200_s11  ;;  %v359_v19 = vmul.f32 %v358_v14, %v1054_v57  ;;  %v366_v20 = vstv %s1202_s6  ;;  %s1317_s11 = sld [smem:[#allocation8 + $0x4a]]  ;;  %s1321_s6 = sld [smem:[#allocation8 + $0x4b]] }
  0x75   :  { %v374_v21 = vstv %s1208_s12  ;;  %v377_v23 = vstv %s1210_s13  ;;  %v321_v24 = vadd.f32 %v320_v8, %v317_v15  ;;  %v381_v30 = vstv %s1214_s14  ;;  %s1327_s12 = sld [smem:[#allocation9 + $0x6]]  ;;  %s1329_s13 = sld [smem:[#allocation8 + $0x4c]] }
  0x76   :  { %v348_v25 = vadd.f32 %v347_v10, %v344_v16  ;;  %v375_v28 = vmul.f32 %v374_v21, %v992_v22  ;;  %v378_v29 = vmul.f32 %v377_v23, %v1000_v26  ;;  %v385_v31 = vstv %s1216_s15  ;;  %s1336_s14 = sld [smem:[#allocation8 + $0x4d]]  ;;  %s1340_s15 = sld [smem:[#allocation8 + $0x4e]] }
  0x77   :  { %v389_v32 = vstv %s1222_s16  ;;  %v393_v33 = vstv %s1224_s17  ;;  %v325_v35 = vadd.f32 %v324_v12, %v321_v24  ;;  %v382_v40 = vmul.f32 %v381_v30, %v1002_v27  ;;  %s1342_s16 = sld [smem:[#allocation8 + $0x4f]]  ;;  %s1348_s17 = sld [smem:[#allocation8 + $0x50]] }
  0x78   :  { %v352_v36 = vadd.f32 %v351_v13, %v348_v25  ;;  %v379_v39 = vadd.f32 %v378_v29, %v375_v28  ;;  %v243_v41 = vmax.f32 %v1228_v4, 0.0  ;;  %v327_v42 = vstv %s1230_s0  ;;  %s1350_s0 = sld [smem:[#allocation8 + $0x51]] }
  0x79   :  { %v386_v43 = vmul.f32 %v385_v31, %v1016_v34  ;;  %v397_v44 = vstv %s1234_s2  ;;  %v370_v46 = vstv %s1238_s18  ;;  %v390_v48 = vmul.f32 %v389_v32, %v1024_v38  ;;  %s1355_s2 = sld [smem:[#allocation8 + $0x52]]  ;;  %s1382_s18 = sld [smem:[#allocation8 + $0x57]] }
  0x7a   :  { %v356_v45 = vadd.f32 %v355_v17, %v352_v36  ;;  %v383_v47 = vadd.f32 %v382_v40, %v379_v39  ;;  %v286_v49 = vmax.f32 %v1240_v11, 0.0  ;;  %v363_v51 = vmul.f32 %v362_v18, %v1059_v60 }
  0x7b   :  { %v367_v52 = vmul.f32 %v366_v20, %v1061_v61  ;;  %v394_v53 = vmul.f32 %v393_v33, %v1044_v50  ;;  %v1292_v54 = vadd.f32 %v327_v42, %v325_v35  ;;  %v398_v59 = vmul.f32 %v397_v44, %v1052_v56 }
  0x7c   :  { %v360_v55 = vadd.f32 %v359_v19, %v356_v45  ;;  %v387_v58 = vadd.f32 %v386_v43, %v383_v47  ;;  %v401_v62 = vstv %s1247_s19  ;;  %v405_v63 = vstv %s1249_s20  ;;  %s1357_s19 = sld [smem:[#allocation8 + $0x53]]  ;;  %s1362_s20 = sld [smem:[#allocation8 + $0x54]] }
  0x7d   :  { %v417_v0 = vstv %s1255_s21  ;;  %v420_v1 = vstv %s1257_s22  ;;  %v409_v5 = vstv %s1261_s23  ;;  %v424_v9 = vstv %s1263_s4  ;;  %s1364_s21 = sld [smem:[#allocation8 + $0x55]]  ;;  %s1375_s22 = sld [smem:[#allocation8 + $0x56]] }
  0x7e   :  { %v391_v2 = vadd.f32 %v390_v48, %v387_v58  ;;  %v418_v6 = vmul.f32 %v417_v0, %v992_v22  ;;  %v421_v7 = vmul.f32 %v420_v1, %v1000_v26  ;;  %v364_v8 = vadd.f32 %v363_v51, %v360_v55  ;;  %s1386_s23 = sld [smem:[#allocation8 + $0x58]]  ;;  %s1388_s4 = sld [smem:[#allocation8 + $0x59]] }
  0x7f   :  { %v428_v10 = vstv %s1269_s24  ;;  %v432_v12 = vstv %s1271_s25  ;;  %v402_v14 = vmul.f32 %v401_v62, %v1054_v57  ;;  %v425_v16 = vmul.f32 %v424_v9, %v1002_v27  ;;  %s1394_s24 = sld [smem:[#allocation8 + $0x5a]]  ;;  %s1396_s25 = sld [smem:[#allocation8 + $0x5b]] }
  0x80   :  { %v395_v13 = vadd.f32 %v394_v53, %v391_v2  ;;  %v422_v15 = vadd.f32 %v421_v7, %v418_v6  ;;  %v413_v17 = vstv %s1274_s26  ;;  %v429_v18 = vmul.f32 %v428_v10, %v1016_v34  ;;  %s1431_s26 = sld [smem:[#allocation9 + $0x8]] }
  0x81   :  { %v436_v19 = vstv %s1280_s27  ;;  %v440_v20 = vstv %s1282_s28  ;;  %v329_v21 = vmax.f32 %v1292_v54, 0.0  ;;  %v433_v25 = vmul.f32 %v432_v12, %v1024_v38  ;;  %s1400_s27 = sld [smem:[#allocation8 + $0x5c]]  ;;  %s1402_s28 = sld [smem:[#allocation8 + $0x5d]] }
  0x82   :  { %v399_v23 = vadd.f32 %v398_v59, %v395_v13  ;;  %v426_v24 = vadd.f32 %v425_v16, %v422_v15  ;;  %v368_v28 = vadd.f32 %v367_v52, %v364_v8  ;;  %v406_v29 = vmul.f32 %v405_v63, %v1059_v60 }
  0x83   :  { %v410_v30 = vmul.f32 %v409_v5, %v1061_v61  ;;  %v444_v31 = vstv %s1290_s29  ;;  %v437_v35 = vmul.f32 %v436_v19, %v1044_v50  ;;  %v441_v36 = vmul.f32 %v440_v20, %v1052_v56  ;;  %s1408_s29 = sld [smem:[#allocation8 + $0x5e]] }
  0x84   :  { %v403_v32 = vadd.f32 %v402_v14, %v399_v23  ;;  %v430_v33 = vadd.f32 %v429_v18, %v426_v24  ;;  %v448_v39 = vstv %s1295_s30  ;;  %v452_v40 = vstv %s1297_s8  ;;  %s1410_s30 = sld [smem:[#allocation8 + $0x5f]] }
  0x85   :  { %v460_v42 = vstv %s1303_s9  ;;  %v463_v43 = vstv %s1305_s1  ;;  %v445_v45 = vmul.f32 %v444_v31, %v1054_v57  ;;  %v467_v52 = vstv %s1310_s3  ;;  %s1418_s8 = sld [smem:[#allocation9 + $0x7]]  ;;  %s1424_s9 = sld [smem:[#allocation8 + $0x60]] }
  0x86   :  { %v434_v44 = vadd.f32 %v433_v25, %v430_v33  ;;  %v461_v47 = vmul.f32 %v460_v42, %v992_v22  ;;  %v464_v48 = vmul.f32 %v463_v43, %v1000_v26  ;;  %v407_v51 = vadd.f32 %v406_v29, %v403_v32  ;;  %s1435_s1 = sld [smem:[#allocation8 + $0x61]]  ;;  %s1437_s3 = sld [smem:[#allocation8 + $0x62]] }
  0x87   :  { %v471_v53 = vstv %s1315_s10  ;;  %v475_v55 = vstv %s1317_s11  ;;  %v468_v62 = vmul.f32 %v467_v52, %v1002_v27  ;;  %v479_v63 = vstv %s1321_s6  ;;  %s1443_s10 = sld [smem:[#allocation11]]  ;;  %s1445_s11 = sld [smem:[#allocation11 + $0x1]] }
  0x88   :  { %v438_v58 = vadd.f32 %v437_v35, %v434_v44  ;;  %v465_v59 = vadd.f32 %v464_v48, %v461_v47  ;;  %v1370_v0 = vadd.f32 %v370_v46, %v368_v28  ;;  %v456_v1 = vstv %s1327_s12  ;;  %s1449_s6 = sld [smem:[#allocation11 + $0x2]]  ;;  %s1455_s12 = sld [smem:[#allocation11 + $0x3]] }
  0x89   :  { %v472_v2 = vmul.f32 %v471_v53, %v1016_v34  ;;  %v483_v5 = vstv %s1329_s13  ;;  %v449_v7 = vmul.f32 %v448_v39, %v1059_v60  ;;  %v476_v9 = vmul.f32 %v475_v55, %v1024_v38  ;;  %s1457_s13 = sld [smem:[#allocation11 + $0x4]] }
  0x8a   :  { %v442_v6 = vadd.f32 %v441_v36, %v438_v58  ;;  %v469_v8 = vadd.f32 %v468_v62, %v465_v59  ;;  %v411_v10 = vadd.f32 %v410_v30, %v407_v51  ;;  %v453_v46 = vmul.f32 %v452_v40, %v1061_v61 }
  0x8b   :  { %v480_v12 = vmul.f32 %v479_v63, %v1044_v50  ;;  %v487_v13 = vstv %s1336_s14  ;;  %v484_v16 = vmul.f32 %v483_v5, %v1052_v56  ;;  %v491_v18 = vstv %s1340_s15  ;;  %s1464_s14 = sld [smem:[#allocation8 + $0x63]]  ;;  %s1466_s15 = sld [smem:[#allocation11 + $0x5]] }
  0x8c   :  { %v446_v14 = vadd.f32 %v445_v45, %v442_v6  ;;  %v473_v15 = vadd.f32 %v472_v2, %v469_v8  ;;  %v488_v19 = vmul.f32 %v487_v13, %v1054_v57  ;;  %v495_v20 = vstv %s1342_s16  ;;  %s1474_s16 = sld [smem:[#allocation11 + $0x6]] }
  0x8d   :  { %v503_v23 = vstv %s1348_s17  ;;  %v506_v24 = vstv %s1350_s0  ;;  %v510_v31 = vstv %s1355_s2  ;;  %v514_v32 = vstv %s1357_s19  ;;  %s1481_s17 = sld [smem:[#allocation11 + $0x7]]  ;;  %s1488_s0 = sld [smem:[#allocation9 + $0x9]] }
  0x8e   :  { %v450_v25 = vadd.f32 %v449_v7, %v446_v14  ;;  %v477_v28 = vadd.f32 %v476_v9, %v473_v15  ;;  %v504_v29 = vmul.f32 %v503_v23, %v992_v22  ;;  %v507_v30 = vmul.f32 %v506_v24, %v1000_v26  ;;  %s1493_s2 = sld [smem:[#allocation11 + $0x8]]  ;;  %s782_s19 = sld [smem:[#allocation11 + $0x9]] }
  0x8f   :  { %v518_v33 = vstv %s1362_s20  ;;  %v522_v35 = vstv %s1364_s21  ;;  %v511_v42 = vmul.f32 %v510_v31, %v1002_v27  ;;  %v372_v43 = vmax.f32 %v1370_v0, 0.0 }
  0x90   :  { %v454_v36 = vadd.f32 %v453_v46, %v450_v25  ;;  %v481_v39 = vadd.f32 %v480_v12, %v477_v28  ;;  %v508_v40 = vadd.f32 %v507_v30, %v504_v29  ;;  %v1416_v44 = vadd.f32 %v413_v17, %v411_v10 }
  0x91   :  { %v515_v45 = vmul.f32 %v514_v32, %v1016_v34  ;;  %v526_v47 = vstv %s1375_s22  ;;  %v492_v51 = vmul.f32 %v491_v18, %v1059_v60  ;;  %v519_v53 = vmul.f32 %v518_v33, %v1024_v38  ;;  %s884_s22 = smov [#allocation12]  }
  0x92   :  { %v485_v48 = vadd.f32 %v484_v16, %v481_v39  ;;  %v512_v52 = vadd.f32 %v511_v42, %v508_v40  ;;  %v1426_v55 = vadd.f32 %v456_v1, %v454_v36  ;;  %v496_v17 = vmul.f32 %v495_v20, %v1061_v61 }
  0x93   :  { %v523_v58 = vmul.f32 %v522_v35, %v1044_v50  ;;  %v530_v59 = vstv %s1382_s18  ;;  %v527_v2 = vmul.f32 %v526_v47, %v1052_v56  ;;  %v534_v5 = vstv %s1386_s23  ;;  %s637_s18 = sshll.u32 %s884_s22, 4  ;;  %s638_s18 = int_to_ptr.vmem [resolvable:$true] %s637_s18 }
  0x94   :  { %v489_v62 = vadd.f32 %v488_v19, %v485_v48  ;;  %v516_v63 = vadd.f32 %v515_v45, %v512_v52  ;;  %v531_v1 = vmul.f32 %v530_v59, %v1054_v57  ;;  %v538_v6 = vstv %s1388_s4  ;;  %s849_s23 = scalar_lea.vmem %s638_s18, 16  ;;  %s853_s4 = scalar_lea.vmem %s638_s18, 32 }
  0x95   :  { %v546_v7 = vstv %s1394_s24  ;;  %v549_v8 = vstv %s1396_s25  ;;  %v553_v13 = vstv %s1400_s27  ;;  %v557_v14 = vstv %s1402_s28  ;;  %p850_p11 = scmp.ne.s32.totalorder %s638_s18, %s849_s23  ;;  %p854_p12 = scmp.lt.s32.totalorder %s638_s18, %s638_s18 }
  0x96   :  { %v493_v9 = vadd.f32 %v492_v51, %v489_v62  ;;  %v520_v10 = vadd.f32 %v519_v53, %v516_v63  ;;  %v547_v46 = vmul.f32 %v546_v7, %v992_v22  ;;  %v550_v12 = vmul.f32 %v549_v8, %v1000_v26  ;;  %p855_p13 = scmp.lt.s32.totalorder %s853_s4, %s849_s23 }
  0x97   :  { %v561_v15 = vstv %s1408_s29  ;;  %v565_v16 = vstv %s1410_s30  ;;  %v554_v23 = vmul.f32 %v553_v13, %v1002_v27  ;;  %v415_v22 = vmax.f32 %v1416_v44, 0.0 }
  0x98   :  { %v497_v18 = vadd.f32 %v496_v17, %v493_v9  ;;  %v524_v19 = vadd.f32 %v523_v58, %v520_v10  ;;  %v551_v20 = vadd.f32 %v550_v12, %v547_v46  ;;  %v499_v26 = vstv %s1418_s8  ;;  %p856_p0 = por %p855_p13, %p854_p12 }
  0x99   :  { %v535_v24 = vmul.f32 %v534_v5, %v1059_v60  ;;  %v558_v25 = vmul.f32 %v557_v14, %v1016_v34  ;;  %v562_v30 = vmul.f32 %v561_v15, %v1024_v38  ;;  %v569_v27 = vstv %s1424_s9 }
  0x9a   :  { %v528_v28 = vadd.f32 %v527_v2, %v524_v19  ;;  %v555_v29 = vadd.f32 %v554_v23, %v551_v20  ;;  %v458_v31 = vmax.f32 %v1426_v55, 0.0  ;;  %v539_v32 = vmul.f32 %v538_v6, %v1061_v61  ;;  %p857_p1 = pnand %p856_p0, %p850_p11 }
  0x9b   :  { %v542_v33 = vstv %s1431_s26  ;;  %v566_v35 = vmul.f32 %v565_v16, %v1044_v50  ;;  %v500_v34 = vadd.f32 %v499_v26, %v497_v18  ;;  %v573_v40 = vstv %s1435_s1 }
  0x9c   :  { %v532_v36 = vadd.f32 %v531_v1, %v528_v28  ;;  %v559_v39 = vadd.f32 %v558_v25, %v555_v29  ;;  %v570_v42 = vmul.f32 %v569_v27, %v1052_v56  ;;  %v577_v38 = vstv %s1437_s3 }
  0x9d   :  { %v589_v44 = vstv %s1443_s10  ;;  %v592_v45 = vstv %s1445_s11  ;;  %v574_v52 = vmul.f32 %v573_v40, %v1054_v57  ;;  %v596_v56 = vstv %s1449_s6 }
  0x9e   :  { %v536_v47 = vadd.f32 %v535_v24, %v532_v36  ;;  %v563_v48 = vadd.f32 %v562_v30, %v559_v39  ;;  %v590_v50 = vmul.f32 %v589_v44, %v200_v3  ;;  %v593_v51 = vmul.f32 %v592_v45, %v243_v41 }
  0x9f   :  { %v600_v53 = vstv %s1455_s12  ;;  %v604_v55 = vstv %s1457_s13  ;;  %v597_v37 = vmul.f32 %v596_v56, %v286_v49  ;;  %v578_v3 = vmul.f32 %v577_v38, %v1059_v60 }
  0xa0   :  { %v540_v17 = vadd.f32 %v539_v32, %v536_v47  ;;  %v567_v58 = vadd.f32 %v566_v35, %v563_v48  ;;  %v594_v59 = vadd.f32 %v593_v51, %v590_v50  ;;  %v581_v4 = vstv %s1464_s14 }
  0xa1   :  { %v601_v57 = vmul.f32 %v600_v53, %v329_v21  ;;  %v608_v41 = vstv %s1466_s15  ;;  %v605_v5 = vmul.f32 %v604_v55, %v372_v43  ;;  %v501_v1 = vmax.f32 %v500_v34, 0.0 }
  0xa2   :  { %v543_v62 = vadd.f32 %v542_v33, %v540_v17  ;;  %v571_v63 = vadd.f32 %v570_v42, %v567_v58  ;;  %v598_v2 = vadd.f32 %v597_v37, %v594_v59  ;;  %v612_v6 = vstv %s1474_s16 }
  0xa3   :  { %v582_v49 = vmul.f32 %v581_v4, %v1061_v61  ;;  %v609_v7 = vmul.f32 %v608_v41, %v415_v22  ;;  %v616_v8 = vstv %s1481_s17  ;;  %v613_v10 = vmul.f32 %v612_v6, %v458_v31 }
  0xa4   :  { %v575_v11 = vadd.f32 %v574_v52, %v571_v63  ;;  %v602_v60 = vadd.f32 %v601_v57, %v598_v2  ;;  %v544_v54 = vmax.f32 %v543_v62, 0.0  ;;  %v585_v46 = vstv %s1488_s0 }
  0xa5   :  { %v620_v12 = vstv %s1493_s2  ;;  %v617_v15 = vmul.f32 %v616_v8, %v501_v1  ;;  %v624_v18 = vstv %s782_s19  ;;  %v628_v22 = vstv %s1529_s5 }
  0xa6   :  { %v579_v21 = vadd.f32 %v578_v3, %v575_v11  ;;  %v606_v9 = vadd.f32 %v605_v5, %v602_v60  ;;  %v621_v16 = vmul.f32 %v620_v12, %v544_v54 }
  0xa8   :  { %v583_v13 = vadd.f32 %v582_v49, %v579_v21  ;;  %v610_v14 = vadd.f32 %v609_v7, %v606_v9 }
  0xaa   :  { %v586_v0 = vadd.f32 %v585_v46, %v583_v13  ;;  %v614_v43 = vadd.f32 %v613_v10, %v610_v14 }
  0xac   :  { %v587_v19 = vmax.f32 %v586_v0, 0.0  ;;  %v618_v20 = vadd.f32 %v617_v15, %v614_v43 }
  0xae   :  { %v622_v23 = vadd.f32 %v621_v16, %v618_v20  ;;  %v625_v61 = vmul.f32 %v624_v18, %v587_v19 }
  0xb0   :  { %v626_v26 = vadd.f32 %v625_v61, %v622_v23 }
  0xb2   :  { %v629_v24 = vadd.f32 %v628_v22, %v626_v26 }
  0xb4   :  { %630 = vst [vmem:[#allocation12] sm:$0x1] %v629_v24 }
  0xb5   :  { %860 = shalt.err (!%p857_p1)
}
  0xb6   :  { %s861_s27 = scalar_lea.hbm %s1531_s7, 16 }
  0xb7   :  { %p862_p2 = scmp.ne.s32.totalorder %s1531_s7, %s861_s27  ;;  %p865_p3 = scmp.lt.u32.totalorder %s861_s27, %s1531_s7 }
  0xb9   :  { %p867_p4 = pnand %p865_p3, %p862_p2 }
  0xbb   :  { %870 = shalt.err (!%p867_p4)
}
  0xbc   :  { %640 = dma.vmem_to_hbm [thread:$0]  %s638_s18, 16, %s1531_s7, [#allocation4]  }
  0xbd   :  { %877 = dma.done.wait [#allocation4], 16  }
  0xbe   :  { %878 = vsyncadd [#allocation4], 4294967280 }
  0xbf   :  { %644 = vsyncpa [#allocation4], 1 }
  0xc0   :  { %645 = vsyncpa [#allocation5], 1 }
  0xc1   :  { %646 = vsyncpa [#allocation7], 1 }
  0xc2   :  { %647 = vsyncpa [#allocation10], 1 }

</bundles_post_ra>
